<compile_context>
chip_gen: v7x
topology: tpu7x:2x2x1
jax: 0.10.0
libtpu: 0.0.40
codegen_flags: <defaults>
</compile_context>

<pallas_src>
import functools
import math

import jax
import jax.numpy as jnp
from jax.experimental import pallas as pl
from jax.experimental.pallas import tpu as pltpu

# ----------------------------- model config ---------------------------------
VOCAB = 100          # toy vocab
E = 32               # bert hidden_size (embedding_dim)
H = 2                # attention heads
D = E // H           # head dim
FFN = 64             # intermediate size
LAYERS = 2           # encoder layers
MAX_POS = 64
OUT_DIM = 3          # classifier output_dim
HIDDEN_LAYERS = 5    # classifier hidden_layers
PAD = 128            # lane-dense padding of head weights / output store
B, S = 2, 8          # example batch / seq len


# ----------------------------- shared math helpers ---------------------------
def _ln(x, g, b, eps=1e-12):
    mu = jnp.mean(x, axis=-1, keepdims=True)
    xc = x - mu
    var = jnp.mean(xc * xc, axis=-1, keepdims=True)
    return xc * jax.lax.rsqrt(var + eps) * g + b


def _gelu(x):
    c = math.sqrt(2.0 / math.pi)
    return 0.5 * x * (1.0 + jnp.tanh(c * (x + 0.044715 * x * x * x)))


# ----------------------------- fused Pallas kernel ---------------------------
def _fused_kernel(x_ref, mask_ref,
                  emb_g_ref, emb_b_ref,
                  wq_ref, bq_ref, wk_ref, bk_ref, wv_ref, bv_ref,
                  wo_ref, bo_ref, ln1g_ref, ln1b_ref,
                  w1_ref, b1_ref, w2_ref, b2_ref, ln2g_ref, ln2b_ref,
                  hw0_ref, hb0_ref, hwr_ref, hbr_ref,
                  o_ref, *, num_layers, num_heads, num_head_rest):
    """One grid step == one batch element. Everything stays in VMEM/vregs."""
    x = _ln(x_ref[...], emb_g_ref[...], emb_b_ref[...])      # (S, E)
    mask_b = mask_ref[0]                                      # (1, S) additive bias
    scale = 1.0 / math.sqrt(D)

    for l in range(num_layers):
        # ---- multi-head self-attention (heads sliced on leading axes only) ----
        attn = jnp.zeros_like(x)                              # (S, E)
        for h in range(num_heads):
            q = jnp.dot(x, wq_ref[l, h], preferred_element_type=jnp.float32) + bq_ref[l, h]
            k = jnp.dot(x, wk_ref[l, h], preferred_element_type=jnp.float32) + bk_ref[l, h]
            v = jnp.dot(x, wv_ref[l, h], preferred_element_type=jnp.float32) + bv_ref[l, h]

            # q @ k^T without an explicit transpose: contract D on both sides.
            s_ = jax.lax.dot_general(q, k, (((1,), (1,)), ((), ())),
                                     preferred_element_type=jnp.float32) * scale
            s_ = s_ + mask_b                                  # key-only additive mask
            s_ = s_ - jnp.max(s_, axis=-1, keepdims=True)
            p_ = jnp.exp(s_)
            denom = jnp.sum(p_, axis=-1, keepdims=True)
            p_ = p_ * pl.reciprocal(denom, approx=True)       # EUP reciprocal

            ctx = jnp.dot(p_, v, preferred_element_type=jnp.float32)             # (S, D)
            attn = attn + jnp.dot(ctx, wo_ref[l, h], preferred_element_type=jnp.float32)

        x = _ln(x + attn + bo_ref[l], ln1g_ref[l], ln1b_ref[l])

        # ---- feed-forward ----
        hmid = _gelu(jnp.dot(x, w1_ref[l], preferred_element_type=jnp.float32) + b1_ref[l])
        ffn = jnp.dot(hmid, w2_ref[l], preferred_element_type=jnp.float32) + b2_ref[l]
        x = _ln(x + ffn, ln2g_ref[l], ln2b_ref[l])

    # ---- CLS token + MLP head (lane-dense, zero-padded slabs) ----
    y = x[0:1, :]                                             # (1, E)
    y = jnp.dot(y, hw0_ref[...], preferred_element_type=jnp.float32) + hb0_ref[...]
    y = jnp.maximum(y, 0.0)                                   # ReLU after layer 0
    for i in range(num_head_rest):
        y = jnp.dot(y, hwr_ref[i], preferred_element_type=jnp.float32) + hbr_ref[i]
        if i < num_head_rest - 1:                             # ReLU on all but last
            y = jnp.maximum(y, 0.0)

    o_ref[0] = y.astype(o_ref.dtype)                          # lane-dense (1, 128) store


# ----------------------------- parameter init --------------------------------
def init_params(key):
    keys = iter(jax.random.split(key, 256))

    def w_init(shape):
        fan_in = shape[-2]
        return jax.random.normal(next(keys), shape, dtype=jnp.float32) / math.sqrt(fan_in)

    def b_init(shape):
        return 0.01 * jax.random.normal(next(keys), shape, dtype=jnp.float32)

    params = {
        "word_emb": 0.02 * jax.random.normal(next(keys), (VOCAB, E), dtype=jnp.float32),
        "pos_emb": 0.02 * jax.random.normal(next(keys), (MAX_POS, E), dtype=jnp.float32),
        "type_emb": 0.02 * jax.random.normal(next(keys), (2, E), dtype=jnp.float32),
        "emb_ln_g": jnp.ones((E,), jnp.float32),
        "emb_ln_b": jnp.zeros((E,), jnp.float32),
        "layers": [],
    }
    for _ in range(LAYERS):
        lp = {
            "wq": w_init((E, E)), "bq": b_init((E,)),
            "wk": w_init((E, E)), "bk": b_init((E,)),
            "wv": w_init((E, E)), "bv": b_init((E,)),
            "wo": w_init((E, E)), "bo": b_init((E,)),
            "ln1_g": jnp.ones((E,), jnp.float32), "ln1_b": jnp.zeros((E,), jnp.float32),
            "w1": w_init((E, FFN)), "b1": b_init((FFN,)),
            "w2": w_init((FFN, E)), "b2": b_init((E,)),
            "ln2_g": jnp.ones((E,), jnp.float32), "ln2_b": jnp.zeros((E,), jnp.float32),
        }
        params["layers"].append(lp)

    # classifier head: (HIDDEN_LAYERS-1) x [Linear(E,E)+ReLU],
    # Linear(E, E//2)+ReLU, Linear(E//2, OUT_DIM)
    head = []
    for _ in range(HIDDEN_LAYERS - 1):
        head.append((w_init((E, E)), b_init((E,))))
    head.append((w_init((E, E // 2)), b_init((E // 2,))))
    head.append((w_init((E // 2, OUT_DIM)), b_init((OUT_DIM,))))
    params["head"] = head
    return params


# ----------------------------- forward pass (wrapper) -------------------------
def transformer_classifier_forward(params, input_ids, attention_mask):
    b, s = input_ids.shape

    # embedding gather stays in JAX glue (tiny, data-dependent)
    emb = (params["word_emb"][input_ids]
           + params["pos_emb"][jnp.arange(s)][None, :, :]
           + params["type_emb"][0][None, None, :])
    x = emb.reshape(b * s, E).astype(jnp.float32)

    # additive key-mask bias: (B, 1, S)
    mask_bias = ((1.0 - attention_mask.astype(jnp.float32)) * -1e9).reshape(b, 1, s)

    # ---- weight re-layout: stack per-layer weights along a leading axis ----
    layers = params["layers"]
    L = len(layers)

    def stack(fn):
        return jnp.stack([fn(lp) for lp in layers], axis=0)

    wq_all = stack(lambda lp: lp["wq"].reshape(E, H, D).transpose(1, 0, 2))   # (L,H,E,D)
    bq_all = stack(lambda lp: lp["bq"].reshape(H, 1, D))                      # (L,H,1,D)
    wk_all = stack(lambda lp: lp["wk"].reshape(E, H, D).transpose(1, 0, 2))
    bk_all = stack(lambda lp: lp["bk"].reshape(H, 1, D))
    wv_all = stack(lambda lp: lp["wv"].reshape(E, H, D).transpose(1, 0, 2))
    bv_all = stack(lambda lp: lp["bv"].reshape(H, 1, D))
    wo_all = stack(lambda lp: lp["wo"].reshape(H, D, E))                      # (L,H,D,E)
    bo_all = stack(lambda lp: lp["bo"].reshape(1, E))                         # (L,1,E)
    ln1g_all = stack(lambda lp: lp["ln1_g"].reshape(1, E))
    ln1b_all = stack(lambda lp: lp["ln1_b"].reshape(1, E))
    w1_all = stack(lambda lp: lp["w1"])                                       # (L,E,FFN)
    b1_all = stack(lambda lp: lp["b1"].reshape(1, FFN))
    w2_all = stack(lambda lp: lp["w2"])                                       # (L,FFN,E)
    b2_all = stack(lambda lp: lp["b2"].reshape(1, E))
    ln2g_all = stack(lambda lp: lp["ln2_g"].reshape(1, E))
    ln2b_all = stack(lambda lp: lp["ln2_b"].reshape(1, E))

    # ---- MLP head: zero-pad to 128 lanes and stack (lane-dense MXU tiles) ----
    head = params["head"]
    n_head = len(head)
    w0, b0 = head[0]
    hw0 = jnp.zeros((E, PAD), jnp.float32).at[:, :w0.shape[1]].set(w0)
    hb0 = jnp.zeros((1, PAD), jnp.float32).at[0, :b0.shape[0]].set(b0)
    hwr = jnp.stack([
        jnp.zeros((PAD, PAD), jnp.float32).at[:w.shape[0], :w.shape[1]].set(w)
        for (w, _) in head[1:]
    ])                                                                        # (n-1,128,128)
    hbr = jnp.stack([
        jnp.zeros((1, PAD), jnp.float32).at[0, :bb.shape[0]].set(bb)
        for (_, bb) in head[1:]
    ])                                                                        # (n-1,1,128)

    weight_args = [
        params["emb_ln_g"].reshape(1, E), params["emb_ln_b"].reshape(1, E),
        wq_all, bq_all, wk_all, bk_all, wv_all, bv_all,
        wo_all, bo_all, ln1g_all, ln1b_all,
        w1_all, b1_all, w2_all, b2_all, ln2g_all, ln2b_all,
        hw0, hb0, hwr, hbr,
    ]

    def _rep(a):  # weight blocks: full array, same block for every grid step
        nd = a.ndim
        return pl.BlockSpec(a.shape, lambda i, _nd=nd: (0,) * _nd)

    kernel = functools.partial(_fused_kernel, num_layers=L, num_heads=H,
                               num_head_rest=n_head - 1)

    out = pl.pallas_call(
        kernel,
        out_shape=jax.ShapeDtypeStruct((b, 1, PAD), jnp.float32),
        grid=(b,),
        in_specs=[pl.BlockSpec((s, E), lambda i: (i, 0)),        # this batch's rows
                  pl.BlockSpec((1, 1, s), lambda i: (i, 0, 0))]  # this batch's mask
                 + [_rep(a) for a in weight_args],
        out_specs=pl.BlockSpec((1, 1, PAD), lambda i: (i, 0, 0)),
        compiler_params=pltpu.CompilerParams(dimension_semantics=("parallel",)),
    )(x, mask_bias, *weight_args)

    return out[:, 0, :OUT_DIM]


# ----------------------------- pure-JAX reference ------------------------------
def reference_forward(params, input_ids, attention_mask):
    HI = jax.lax.Precision.HIGHEST
    b, s = input_ids.shape
    x = (params["word_emb"][input_ids]
         + params["pos_emb"][jnp.arange(s)][None, :, :]
         + params["type_emb"][0][None, None, :]).astype(jnp.float32)
    x = _ln(x, params["emb_ln_g"], params["emb_ln_b"])
    bias = (1.0 - attention_mask.astype(jnp.float32))[:, None, None, :] * -1e9

    def lin(t, w, bb):
        return jnp.matmul(t, w, precision=HI) + bb

    for lp in params["layers"]:
        q = lin(x, lp["wq"], lp["bq"]).reshape(b, s, H, D).transpose(0, 2, 1, 3)
        k = lin(x, lp["wk"], lp["bk"]).reshape(b, s, H, D).transpose(0, 2, 1, 3)
        v = lin(x, lp["wv"], lp["bv"]).reshape(b, s, H, D).transpose(0, 2, 1, 3)
        scores = jnp.einsum("bhqd,bhkd->bhqk", q, k, precision=HI) / math.sqrt(D) + bias
        p = jax.nn.softmax(scores, axis=-1)
        ctx = jnp.einsum("bhqk,bhkd->bhqd", p, v, precision=HI)
        ctx = ctx.transpose(0, 2, 1, 3).reshape(b, s, E)
        x = _ln(x + lin(ctx, lp["wo"], lp["bo"]), lp["ln1_g"], lp["ln1_b"])
        hmid = _gelu(lin(x, lp["w1"], lp["b1"]))
        x = _ln(x + lin(hmid, lp["w2"], lp["b2"]), lp["ln2_g"], lp["ln2_b"])

    y = x[:, 0, :]
    n = len(params["head"])
    for i, (w, bb) in enumerate(params["head"]):
        y = jnp.matmul(y, w, precision=HI) + bb
        if i < n - 1:
            y = jnp.maximum(y, 0.0)
    return y


# ----------------------------- main -------------------------------------------
if __name__ == "__main__":
    key = jax.random.PRNGKey(0)
    pkey, dkey = jax.random.split(key)

    params = init_params(pkey)
    input_ids = jax.random.randint(dkey, (B, S), 0, VOCAB, dtype=jnp.int32)
    # attention mask: all ones except last two positions of batch element 1
    attention_mask = jnp.ones((B, S), dtype=jnp.int32).at[1, S - 2:].set(0)

    fwd = jax.jit(transformer_classifier_forward)
    logits = fwd(params, input_ids, attention_mask)
    jax.block_until_ready(logits)

    assert logits.shape == (B, OUT_DIM), logits.shape
    assert bool(jnp.all(jnp.isfinite(logits)))

    ref = jax.jit(reference_forward)(params, input_ids, attention_mask)
    assert bool(jnp.allclose(logits, ref, atol=1e-2, rtol=1e-1)), (logits, ref)

    print("KERNEL_OK")
</pallas_src>

<mosaic_0001>
module attributes {stable_mosaic.version = 11 : i64} {
  func.func @_fused_kernel(%arg0: i32, %arg1: memref<8x32xf32, #tpu.memory_space<vmem>>, %arg2: memref<1x1x8xf32, #tpu.memory_space<vmem>>, %arg3: memref<1x32xf32, #tpu.memory_space<vmem>>, %arg4: memref<1x32xf32, #tpu.memory_space<vmem>>, %arg5: memref<2x2x32x16xf32, #tpu.memory_space<vmem>>, %arg6: memref<2x2x1x16xf32, #tpu.memory_space<vmem>>, %arg7: memref<2x2x32x16xf32, #tpu.memory_space<vmem>>, %arg8: memref<2x2x1x16xf32, #tpu.memory_space<vmem>>, %arg9: memref<2x2x32x16xf32, #tpu.memory_space<vmem>>, %arg10: memref<2x2x1x16xf32, #tpu.memory_space<vmem>>, %arg11: memref<2x2x16x32xf32, #tpu.memory_space<vmem>>, %arg12: memref<2x1x32xf32, #tpu.memory_space<vmem>>, %arg13: memref<2x1x32xf32, #tpu.memory_space<vmem>>, %arg14: memref<2x1x32xf32, #tpu.memory_space<vmem>>, %arg15: memref<2x32x64xf32, #tpu.memory_space<vmem>>, %arg16: memref<2x1x64xf32, #tpu.memory_space<vmem>>, %arg17: memref<2x64x32xf32, #tpu.memory_space<vmem>>, %arg18: memref<2x1x32xf32, #tpu.memory_space<vmem>>, %arg19: memref<2x1x32xf32, #tpu.memory_space<vmem>>, %arg20: memref<2x1x32xf32, #tpu.memory_space<vmem>>, %arg21: memref<32x128xf32, #tpu.memory_space<vmem>>, %arg22: memref<1x128xf32, #tpu.memory_space<vmem>>, %arg23: memref<5x128x128xf32, #tpu.memory_space<vmem>>, %arg24: memref<5x1x128xf32, #tpu.memory_space<vmem>>, %arg25: memref<1x1x128xf32, #tpu.memory_space<vmem>>) attributes {dimension_semantics = [#tpu.dimension_semantics<parallel>], iteration_bounds = array<i64: 2>, scalar_prefetch = 0 : i64, scratch_operands = 0 : i64, tpu.core_type = #tpu.core_type<tc>, window_params = [{transform_indices = @transform_0, window_bounds = array<i64: 8, 32>}, {transform_indices = @transform_1, window_bounds = array<i64: 1, 1, 8>}, {pipeline_mode = #tpu.pipeline_mode<synchronous>, transform_indices = @transform_2, window_bounds = array<i64: 1, 32>}, {pipeline_mode = #tpu.pipeline_mode<synchronous>, transform_indices = @transform_3, window_bounds = array<i64: 1, 32>}, {pipeline_mode = #tpu.pipeline_mode<synchronous>, transform_indices = @transform_4, window_bounds = array<i64: 2, 2, 32, 16>}, {pipeline_mode = #tpu.pipeline_mode<synchronous>, transform_indices = @transform_5, window_bounds = array<i64: 2, 2, 1, 16>}, {pipeline_mode = #tpu.pipeline_mode<synchronous>, transform_indices = @transform_6, window_bounds = array<i64: 2, 2, 32, 16>}, {pipeline_mode = #tpu.pipeline_mode<synchronous>, transform_indices = @transform_7, window_bounds = array<i64: 2, 2, 1, 16>}, {pipeline_mode = #tpu.pipeline_mode<synchronous>, transform_indices = @transform_8, window_bounds = array<i64: 2, 2, 32, 16>}, {pipeline_mode = #tpu.pipeline_mode<synchronous>, transform_indices = @transform_9, window_bounds = array<i64: 2, 2, 1, 16>}, {pipeline_mode = #tpu.pipeline_mode<synchronous>, transform_indices = @transform_10, window_bounds = array<i64: 2, 2, 16, 32>}, {pipeline_mode = #tpu.pipeline_mode<synchronous>, transform_indices = @transform_11, window_bounds = array<i64: 2, 1, 32>}, {pipeline_mode = #tpu.pipeline_mode<synchronous>, transform_indices = @transform_12, window_bounds = array<i64: 2, 1, 32>}, {pipeline_mode = #tpu.pipeline_mode<synchronous>, transform_indices = @transform_13, window_bounds = array<i64: 2, 1, 32>}, {pipeline_mode = #tpu.pipeline_mode<synchronous>, transform_indices = @transform_14, window_bounds = array<i64: 2, 32, 64>}, {pipeline_mode = #tpu.pipeline_mode<synchronous>, transform_indices = @transform_15, window_bounds = array<i64: 2, 1, 64>}, {pipeline_mode = #tpu.pipeline_mode<synchronous>, transform_indices = @transform_16, window_bounds = array<i64: 2, 64, 32>}, {pipeline_mode = #tpu.pipeline_mode<synchronous>, transform_indices = @transform_17, window_bounds = array<i64: 2, 1, 32>}, {pipeline_mode = #tpu.pipeline_mode<synchronous>, transform_indices = @transform_18, window_bounds = array<i64: 2, 1, 32>}, {pipeline_mode = #tpu.pipeline_mode<synchronous>, transform_indices = @transform_19, window_bounds = array<i64: 2, 1, 32>}, {pipeline_mode = #tpu.pipeline_mode<synchronous>, transform_indices = @transform_20, window_bounds = array<i64: 32, 128>}, {pipeline_mode = #tpu.pipeline_mode<synchronous>, transform_indices = @transform_21, window_bounds = array<i64: 1, 128>}, {pipeline_mode = #tpu.pipeline_mode<synchronous>, transform_indices = @transform_22, window_bounds = array<i64: 5, 128, 128>}, {pipeline_mode = #tpu.pipeline_mode<synchronous>, transform_indices = @transform_23, window_bounds = array<i64: 5, 1, 128>}, {transform_indices = @transform_24, window_bounds = array<i64: 1, 1, 128>}]} {
    %c0 = arith.constant 0 : index
    %c0_0 = arith.constant 0 : index
    %0 = vector.load %arg1[%c0, %c0_0] : memref<8x32xf32, #tpu.memory_space<vmem>>, vector<8x32xf32>
    %c0_1 = arith.constant 0 : index
    %c0_2 = arith.constant 0 : index
    %1 = vector.load %arg3[%c0_1, %c0_2] : memref<1x32xf32, #tpu.memory_space<vmem>>, vector<1x32xf32>
    %c0_3 = arith.constant 0 : index
    %c0_4 = arith.constant 0 : index
    %2 = vector.load %arg4[%c0_3, %c0_4] : memref<1x32xf32, #tpu.memory_space<vmem>>, vector<1x32xf32>
    %cst = arith.constant dense<0.000000e+00> : vector<8xf32>
    %3 = vector.multi_reduction <add>, %0, %cst [1] : vector<8x32xf32> to vector<8xf32>
    %4 = vector.shape_cast %3 : vector<8xf32> to vector<8x1xf32>
    %cst_5 = arith.constant 3.200000e+01 : f32
    %5 = vector.broadcast %cst_5 : f32 to vector<8x1xf32>
    %6 = arith.divf %4, %5 : vector<8x1xf32>
    %7 = vector.broadcast %6 : vector<8x1xf32> to vector<8x32xf32>
    %8 = arith.subf %0, %7 : vector<8x32xf32>
    %9 = arith.mulf %8, %8 : vector<8x32xf32>
    %cst_6 = arith.constant dense<0.000000e+00> : vector<8xf32>
    %10 = vector.multi_reduction <add>, %9, %cst_6 [1] : vector<8x32xf32> to vector<8xf32>
    %11 = vector.shape_cast %10 : vector<8xf32> to vector<8x1xf32>
    %cst_7 = arith.constant 3.200000e+01 : f32
    %12 = vector.broadcast %cst_7 : f32 to vector<8x1xf32>
    %13 = arith.divf %11, %12 : vector<8x1xf32>
    %cst_8 = arith.constant 9.99999996E-13 : f32
    %14 = vector.broadcast %cst_8 : f32 to vector<8x1xf32>
    %15 = arith.addf %13, %14 : vector<8x1xf32>
    %16 = math.rsqrt %15 : vector<8x1xf32>
    %17 = vector.broadcast %16 : vector<8x1xf32> to vector<8x32xf32>
    %18 = arith.mulf %8, %17 : vector<8x32xf32>
    %19 = vector.broadcast %1 : vector<1x32xf32> to vector<8x32xf32>
    %20 = arith.mulf %18, %19 : vector<8x32xf32>
    %21 = vector.broadcast %2 : vector<1x32xf32> to vector<8x32xf32>
    %22 = arith.addf %20, %21 : vector<8x32xf32>
    %c0_9 = arith.constant 0 : index
    %c0_10 = arith.constant 0 : index
    %c0_11 = arith.constant 0 : index
    %23 = vector.load %arg2[%c0_9, %c0_10, %c0_11] : memref<1x1x8xf32, #tpu.memory_space<vmem>>, vector<1x1x8xf32>
    %24 = vector.shape_cast %23 : vector<1x1x8xf32> to vector<1x8xf32>
    %cst_12 = arith.constant 0.000000e+00 : f32
    %25 = vector.broadcast %cst_12 : f32 to vector<8x32xf32>
    %c0_13 = arith.constant 0 : index
    %c0_14 = arith.constant 0 : index
    %c0_15 = arith.constant 0 : index
    %c0_16 = arith.constant 0 : index
    %26 = vector.load %arg5[%c0_13, %c0_14, %c0_15, %c0_16] : memref<2x2x32x16xf32, #tpu.memory_space<vmem>>, vector<1x1x32x16xf32>
    %27 = vector.shape_cast %26 : vector<1x1x32x16xf32> to vector<32x16xf32>
    %cst_17 = arith.constant dense<0.000000e+00> : vector<8x16xf32>
    %28 = tpu.matmul %22, %27, %cst_17 {dimension_numbers = #tpu.dot_dimension_numbers<[1], [0], [0], [1], [0, 0, 1, 1], [], []>} : vector<8x32xf32>, vector<32x16xf32>, vector<8x16xf32> -> vector<8x16xf32>
    %c0_18 = arith.constant 0 : index
    %c0_19 = arith.constant 0 : index
    %c0_20 = arith.constant 0 : index
    %c0_21 = arith.constant 0 : index
    %29 = vector.load %arg6[%c0_18, %c0_19, %c0_20, %c0_21] : memref<2x2x1x16xf32, #tpu.memory_space<vmem>>, vector<1x1x1x16xf32>
    %30 = vector.shape_cast %29 : vector<1x1x1x16xf32> to vector<1x16xf32>
    %31 = vector.broadcast %30 : vector<1x16xf32> to vector<8x16xf32>
    %32 = arith.addf %28, %31 : vector<8x16xf32>
    %c0_22 = arith.constant 0 : index
    %c0_23 = arith.constant 0 : index
    %c0_24 = arith.constant 0 : index
    %c0_25 = arith.constant 0 : index
    %33 = vector.load %arg7[%c0_22, %c0_23, %c0_24, %c0_25] : memref<2x2x32x16xf32, #tpu.memory_space<vmem>>, vector<1x1x32x16xf32>
    %34 = vector.shape_cast %33 : vector<1x1x32x16xf32> to vector<32x16xf32>
    %cst_26 = arith.constant dense<0.000000e+00> : vector<8x16xf32>
    %35 = tpu.matmul %22, %34, %cst_26 {dimension_numbers = #tpu.dot_dimension_numbers<[1], [0], [0], [1], [0, 0, 1, 1], [], []>} : vector<8x32xf32>, vector<32x16xf32>, vector<8x16xf32> -> vector<8x16xf32>
    %c0_27 = arith.constant 0 : index
    %c0_28 = arith.constant 0 : index
    %c0_29 = arith.constant 0 : index
    %c0_30 = arith.constant 0 : index
    %36 = vector.load %arg8[%c0_27, %c0_28, %c0_29, %c0_30] : memref<2x2x1x16xf32, #tpu.memory_space<vmem>>, vector<1x1x1x16xf32>
    %37 = vector.shape_cast %36 : vector<1x1x1x16xf32> to vector<1x16xf32>
    %38 = vector.broadcast %37 : vector<1x16xf32> to vector<8x16xf32>
    %39 = arith.addf %35, %38 : vector<8x16xf32>
    %c0_31 = arith.constant 0 : index
    %c0_32 = arith.constant 0 : index
    %c0_33 = arith.constant 0 : index
    %c0_34 = arith.constant 0 : index
    %40 = vector.load %arg9[%c0_31, %c0_32, %c0_33, %c0_34] : memref<2x2x32x16xf32, #tpu.memory_space<vmem>>, vector<1x1x32x16xf32>
    %41 = vector.shape_cast %40 : vector<1x1x32x16xf32> to vector<32x16xf32>
    %cst_35 = arith.constant dense<0.000000e+00> : vector<8x16xf32>
    %42 = tpu.matmul %22, %41, %cst_35 {dimension_numbers = #tpu.dot_dimension_numbers<[1], [0], [0], [1], [0, 0, 1, 1], [], []>} : vector<8x32xf32>, vector<32x16xf32>, vector<8x16xf32> -> vector<8x16xf32>
    %c0_36 = arith.constant 0 : index
    %c0_37 = arith.constant 0 : index
    %c0_38 = arith.constant 0 : index
    %c0_39 = arith.constant 0 : index
    %43 = vector.load %arg10[%c0_36, %c0_37, %c0_38, %c0_39] : memref<2x2x1x16xf32, #tpu.memory_space<vmem>>, vector<1x1x1x16xf32>
    %44 = vector.shape_cast %43 : vector<1x1x1x16xf32> to vector<1x16xf32>
    %45 = vector.broadcast %44 : vector<1x16xf32> to vector<8x16xf32>
    %46 = arith.addf %42, %45 : vector<8x16xf32>
    %cst_40 = arith.constant dense<0.000000e+00> : vector<8x8xf32>
    %47 = tpu.matmul %32, %39, %cst_40 {dimension_numbers = #tpu.dot_dimension_numbers<[1], [1], [0], [0], [0, 0, 1, 0], [], []>} : vector<8x16xf32>, vector<8x16xf32>, vector<8x8xf32> -> vector<8x8xf32>
    %cst_41 = arith.constant 2.500000e-01 : f32
    %48 = vector.broadcast %cst_41 : f32 to vector<8x8xf32>
    %49 = arith.mulf %47, %48 : vector<8x8xf32>
    %50 = vector.broadcast %24 : vector<1x8xf32> to vector<8x8xf32>
    %51 = arith.addf %49, %50 : vector<8x8xf32>
    %cst_42 = arith.constant dense<0xFF800000> : vector<8xf32>
    %52 = vector.multi_reduction <maximumf>, %51, %cst_42 [1] : vector<8x8xf32> to vector<8xf32>
    %53 = vector.shape_cast %52 : vector<8xf32> to vector<8x1xf32>
    %54 = vector.broadcast %53 : vector<8x1xf32> to vector<8x8xf32>
    %55 = arith.subf %51, %54 : vector<8x8xf32>
    %56 = math.exp %55 : vector<8x8xf32>
    %cst_43 = arith.constant dense<0.000000e+00> : vector<8xf32>
    %57 = vector.multi_reduction <add>, %56, %cst_43 [1] : vector<8x8xf32> to vector<8xf32>
    %58 = vector.shape_cast %57 : vector<8xf32> to vector<8x1xf32>
    %59 = tpu.reciprocal %58 {approx = true} : vector<8x1xf32> -> vector<8x1xf32>
    %60 = vector.broadcast %59 : vector<8x1xf32> to vector<8x8xf32>
    %61 = arith.mulf %56, %60 : vector<8x8xf32>
    %cst_44 = arith.constant dense<0.000000e+00> : vector<8x16xf32>
    %62 = tpu.matmul %61, %46, %cst_44 {dimension_numbers = #tpu.dot_dimension_numbers<[1], [0], [0], [1], [0, 0, 1, 1], [], []>} : vector<8x8xf32>, vector<8x16xf32>, vector<8x16xf32> -> vector<8x16xf32>
    %c0_45 = arith.constant 0 : index
    %c0_46 = arith.constant 0 : index
    %c0_47 = arith.constant 0 : index
    %c0_48 = arith.constant 0 : index
    %63 = vector.load %arg11[%c0_45, %c0_46, %c0_47, %c0_48] : memref<2x2x16x32xf32, #tpu.memory_space<vmem>>, vector<1x1x16x32xf32>
    %64 = vector.shape_cast %63 : vector<1x1x16x32xf32> to vector<16x32xf32>
    %cst_49 = arith.constant dense<0.000000e+00> : vector<8x32xf32>
    %65 = tpu.matmul %62, %64, %cst_49 {dimension_numbers = #tpu.dot_dimension_numbers<[1], [0], [0], [1], [0, 0, 1, 1], [], []>} : vector<8x16xf32>, vector<16x32xf32>, vector<8x32xf32> -> vector<8x32xf32>
    %66 = arith.addf %25, %65 : vector<8x32xf32>
    %c0_50 = arith.constant 0 : index
    %c1 = arith.constant 1 : index
    %c0_51 = arith.constant 0 : index
    %c0_52 = arith.constant 0 : index
    %67 = vector.load %arg5[%c0_50, %c1, %c0_51, %c0_52] : memref<2x2x32x16xf32, #tpu.memory_space<vmem>>, vector<1x1x32x16xf32>
    %68 = vector.shape_cast %67 : vector<1x1x32x16xf32> to vector<32x16xf32>
    %cst_53 = arith.constant dense<0.000000e+00> : vector<8x16xf32>
    %69 = tpu.matmul %22, %68, %cst_53 {dimension_numbers = #tpu.dot_dimension_numbers<[1], [0], [0], [1], [0, 0, 1, 1], [], []>} : vector<8x32xf32>, vector<32x16xf32>, vector<8x16xf32> -> vector<8x16xf32>
    %c0_54 = arith.constant 0 : index
    %c1_55 = arith.constant 1 : index
    %c0_56 = arith.constant 0 : index
    %c0_57 = arith.constant 0 : index
    %70 = vector.load %arg6[%c0_54, %c1_55, %c0_56, %c0_57] : memref<2x2x1x16xf32, #tpu.memory_space<vmem>>, vector<1x1x1x16xf32>
    %71 = vector.shape_cast %70 : vector<1x1x1x16xf32> to vector<1x16xf32>
    %72 = vector.broadcast %71 : vector<1x16xf32> to vector<8x16xf32>
    %73 = arith.addf %69, %72 : vector<8x16xf32>
    %c0_58 = arith.constant 0 : index
    %c1_59 = arith.constant 1 : index
    %c0_60 = arith.constant 0 : index
    %c0_61 = arith.constant 0 : index
    %74 = vector.load %arg7[%c0_58, %c1_59, %c0_60, %c0_61] : memref<2x2x32x16xf32, #tpu.memory_space<vmem>>, vector<1x1x32x16xf32>
    %75 = vector.shape_cast %74 : vector<1x1x32x16xf32> to vector<32x16xf32>
    %cst_62 = arith.constant dense<0.000000e+00> : vector<8x16xf32>
    %76 = tpu.matmul %22, %75, %cst_62 {dimension_numbers = #tpu.dot_dimension_numbers<[1], [0], [0], [1], [0, 0, 1, 1], [], []>} : vector<8x32xf32>, vector<32x16xf32>, vector<8x16xf32> -> vector<8x16xf32>
    %c0_63 = arith.constant 0 : index
    %c1_64 = arith.constant 1 : index
    %c0_65 = arith.constant 0 : index
    %c0_66 = arith.constant 0 : index
    %77 = vector.load %arg8[%c0_63, %c1_64, %c0_65, %c0_66] : memref<2x2x1x16xf32, #tpu.memory_space<vmem>>, vector<1x1x1x16xf32>
    %78 = vector.shape_cast %77 : vector<1x1x1x16xf32> to vector<1x16xf32>
    %79 = vector.broadcast %78 : vector<1x16xf32> to vector<8x16xf32>
    %80 = arith.addf %76, %79 : vector<8x16xf32>
    %c0_67 = arith.constant 0 : index
    %c1_68 = arith.constant 1 : index
    %c0_69 = arith.constant 0 : index
    %c0_70 = arith.constant 0 : index
    %81 = vector.load %arg9[%c0_67, %c1_68, %c0_69, %c0_70] : memref<2x2x32x16xf32, #tpu.memory_space<vmem>>, vector<1x1x32x16xf32>
    %82 = vector.shape_cast %81 : vector<1x1x32x16xf32> to vector<32x16xf32>
    %cst_71 = arith.constant dense<0.000000e+00> : vector<8x16xf32>
    %83 = tpu.matmul %22, %82, %cst_71 {dimension_numbers = #tpu.dot_dimension_numbers<[1], [0], [0], [1], [0, 0, 1, 1], [], []>} : vector<8x32xf32>, vector<32x16xf32>, vector<8x16xf32> -> vector<8x16xf32>
    %c0_72 = arith.constant 0 : index
    %c1_73 = arith.constant 1 : index
    %c0_74 = arith.constant 0 : index
    %c0_75 = arith.constant 0 : index
    %84 = vector.load %arg10[%c0_72, %c1_73, %c0_74, %c0_75] : memref<2x2x1x16xf32, #tpu.memory_space<vmem>>, vector<1x1x1x16xf32>
    %85 = vector.shape_cast %84 : vector<1x1x1x16xf32> to vector<1x16xf32>
    %86 = vector.broadcast %85 : vector<1x16xf32> to vector<8x16xf32>
    %87 = arith.addf %83, %86 : vector<8x16xf32>
    %cst_76 = arith.constant dense<0.000000e+00> : vector<8x8xf32>
    %88 = tpu.matmul %73, %80, %cst_76 {dimension_numbers = #tpu.dot_dimension_numbers<[1], [1], [0], [0], [0, 0, 1, 0], [], []>} : vector<8x16xf32>, vector<8x16xf32>, vector<8x8xf32> -> vector<8x8xf32>
    %cst_77 = arith.constant 2.500000e-01 : f32
    %89 = vector.broadcast %cst_77 : f32 to vector<8x8xf32>
    %90 = arith.mulf %88, %89 : vector<8x8xf32>
    %91 = vector.broadcast %24 : vector<1x8xf32> to vector<8x8xf32>
    %92 = arith.addf %90, %91 : vector<8x8xf32>
    %cst_78 = arith.constant dense<0xFF800000> : vector<8xf32>
    %93 = vector.multi_reduction <maximumf>, %92, %cst_78 [1] : vector<8x8xf32> to vector<8xf32>
    %94 = vector.shape_cast %93 : vector<8xf32> to vector<8x1xf32>
    %95 = vector.broadcast %94 : vector<8x1xf32> to vector<8x8xf32>
    %96 = arith.subf %92, %95 : vector<8x8xf32>
    %97 = math.exp %96 : vector<8x8xf32>
    %cst_79 = arith.constant dense<0.000000e+00> : vector<8xf32>
    %98 = vector.multi_reduction <add>, %97, %cst_79 [1] : vector<8x8xf32> to vector<8xf32>
    %99 = vector.shape_cast %98 : vector<8xf32> to vector<8x1xf32>
    %100 = tpu.reciprocal %99 {approx = true} : vector<8x1xf32> -> vector<8x1xf32>
    %101 = vector.broadcast %100 : vector<8x1xf32> to vector<8x8xf32>
    %102 = arith.mulf %97, %101 : vector<8x8xf32>
    %cst_80 = arith.constant dense<0.000000e+00> : vector<8x16xf32>
    %103 = tpu.matmul %102, %87, %cst_80 {dimension_numbers = #tpu.dot_dimension_numbers<[1], [0], [0], [1], [0, 0, 1, 1], [], []>} : vector<8x8xf32>, vector<8x16xf32>, vector<8x16xf32> -> vector<8x16xf32>
    %c0_81 = arith.constant 0 : index
    %c1_82 = arith.constant 1 : index
    %c0_83 = arith.constant 0 : index
    %c0_84 = arith.constant 0 : index
    %104 = vector.load %arg11[%c0_81, %c1_82, %c0_83, %c0_84] : memref<2x2x16x32xf32, #tpu.memory_space<vmem>>, vector<1x1x16x32xf32>
    %105 = vector.shape_cast %104 : vector<1x1x16x32xf32> to vector<16x32xf32>
    %cst_85 = arith.constant dense<0.000000e+00> : vector<8x32xf32>
    %106 = tpu.matmul %103, %105, %cst_85 {dimension_numbers = #tpu.dot_dimension_numbers<[1], [0], [0], [1], [0, 0, 1, 1], [], []>} : vector<8x16xf32>, vector<16x32xf32>, vector<8x32xf32> -> vector<8x32xf32>
    %107 = arith.addf %66, %106 : vector<8x32xf32>
    %108 = arith.addf %22, %107 : vector<8x32xf32>
    %c0_86 = arith.constant 0 : index
    %c0_87 = arith.constant 0 : index
    %c0_88 = arith.constant 0 : index
    %109 = vector.load %arg12[%c0_86, %c0_87, %c0_88] : memref<2x1x32xf32, #tpu.memory_space<vmem>>, vector<1x1x32xf32>
    %110 = vector.shape_cast %109 : vector<1x1x32xf32> to vector<1x32xf32>
    %111 = vector.broadcast %110 : vector<1x32xf32> to vector<8x32xf32>
    %112 = arith.addf %108, %111 : vector<8x32xf32>
    %c0_89 = arith.constant 0 : index
    %c0_90 = arith.constant 0 : index
    %c0_91 = arith.constant 0 : index
    %113 = vector.load %arg13[%c0_89, %c0_90, %c0_91] : memref<2x1x32xf32, #tpu.memory_space<vmem>>, vector<1x1x32xf32>
    %114 = vector.shape_cast %113 : vector<1x1x32xf32> to vector<1x32xf32>
    %c0_92 = arith.constant 0 : index
    %c0_93 = arith.constant 0 : index
    %c0_94 = arith.constant 0 : index
    %115 = vector.load %arg14[%c0_92, %c0_93, %c0_94] : memref<2x1x32xf32, #tpu.memory_space<vmem>>, vector<1x1x32xf32>
    %116 = vector.shape_cast %115 : vector<1x1x32xf32> to vector<1x32xf32>
    %cst_95 = arith.constant dense<0.000000e+00> : vector<8xf32>
    %117 = vector.multi_reduction <add>, %112, %cst_95 [1] : vector<8x32xf32> to vector<8xf32>
    %118 = vector.shape_cast %117 : vector<8xf32> to vector<8x1xf32>
    %cst_96 = arith.constant 3.200000e+01 : f32
    %119 = vector.broadcast %cst_96 : f32 to vector<8x1xf32>
    %120 = arith.divf %118, %119 : vector<8x1xf32>
    %121 = vector.broadcast %120 : vector<8x1xf32> to vector<8x32xf32>
    %122 = arith.subf %112, %121 : vector<8x32xf32>
    %123 = arith.mulf %122, %122 : vector<8x32xf32>
    %cst_97 = arith.constant dense<0.000000e+00> : vector<8xf32>
    %124 = vector.multi_reduction <add>, %123, %cst_97 [1] : vector<8x32xf32> to vector<8xf32>
    %125 = vector.shape_cast %124 : vector<8xf32> to vector<8x1xf32>
    %cst_98 = arith.constant 3.200000e+01 : f32
    %126 = vector.broadcast %cst_98 : f32 to vector<8x1xf32>
    %127 = arith.divf %125, %126 : vector<8x1xf32>
    %cst_99 = arith.constant 9.99999996E-13 : f32
    %128 = vector.broadcast %cst_99 : f32 to vector<8x1xf32>
    %129 = arith.addf %127, %128 : vector<8x1xf32>
    %130 = math.rsqrt %129 : vector<8x1xf32>
    %131 = vector.broadcast %130 : vector<8x1xf32> to vector<8x32xf32>
    %132 = arith.mulf %122, %131 : vector<8x32xf32>
    %133 = vector.broadcast %114 : vector<1x32xf32> to vector<8x32xf32>
    %134 = arith.mulf %132, %133 : vector<8x32xf32>
    %135 = vector.broadcast %116 : vector<1x32xf32> to vector<8x32xf32>
    %136 = arith.addf %134, %135 : vector<8x32xf32>
    %c0_100 = arith.constant 0 : index
    %c0_101 = arith.constant 0 : index
    %c0_102 = arith.constant 0 : index
    %137 = vector.load %arg15[%c0_100, %c0_101, %c0_102] : memref<2x32x64xf32, #tpu.memory_space<vmem>>, vector<1x32x64xf32>
    %138 = vector.shape_cast %137 : vector<1x32x64xf32> to vector<32x64xf32>
    %cst_103 = arith.constant dense<0.000000e+00> : vector<8x64xf32>
    %139 = tpu.matmul %136, %138, %cst_103 {dimension_numbers = #tpu.dot_dimension_numbers<[1], [0], [0], [1], [0, 0, 1, 1], [], []>} : vector<8x32xf32>, vector<32x64xf32>, vector<8x64xf32> -> vector<8x64xf32>
    %c0_104 = arith.constant 0 : index
    %c0_105 = arith.constant 0 : index
    %c0_106 = arith.constant 0 : index
    %140 = vector.load %arg16[%c0_104, %c0_105, %c0_106] : memref<2x1x64xf32, #tpu.memory_space<vmem>>, vector<1x1x64xf32>
    %141 = vector.shape_cast %140 : vector<1x1x64xf32> to vector<1x64xf32>
    %142 = vector.broadcast %141 : vector<1x64xf32> to vector<8x64xf32>
    %143 = arith.addf %139, %142 : vector<8x64xf32>
    %cst_107 = arith.constant 5.000000e-01 : f32
    %144 = vector.broadcast %cst_107 : f32 to vector<8x64xf32>
    %145 = arith.mulf %144, %143 : vector<8x64xf32>
    %cst_108 = arith.constant 4.471500e-02 : f32
    %146 = vector.broadcast %cst_108 : f32 to vector<8x64xf32>
    %147 = arith.mulf %146, %143 : vector<8x64xf32>
    %148 = arith.mulf %147, %143 : vector<8x64xf32>
    %149 = arith.mulf %148, %143 : vector<8x64xf32>
    %150 = arith.addf %143, %149 : vector<8x64xf32>
    %cst_109 = arith.constant 0.797884583 : f32
    %151 = vector.broadcast %cst_109 : f32 to vector<8x64xf32>
    %152 = arith.mulf %151, %150 : vector<8x64xf32>
    %153 = math.tanh %152 : vector<8x64xf32>
    %cst_110 = arith.constant 1.000000e+00 : f32
    %154 = vector.broadcast %cst_110 : f32 to vector<8x64xf32>
    %155 = arith.addf %154, %153 : vector<8x64xf32>
    %156 = arith.mulf %145, %155 : vector<8x64xf32>
    %c0_111 = arith.constant 0 : index
    %c0_112 = arith.constant 0 : index
    %c0_113 = arith.constant 0 : index
    %157 = vector.load %arg17[%c0_111, %c0_112, %c0_113] : memref<2x64x32xf32, #tpu.memory_space<vmem>>, vector<1x64x32xf32>
    %158 = vector.shape_cast %157 : vector<1x64x32xf32> to vector<64x32xf32>
    %cst_114 = arith.constant dense<0.000000e+00> : vector<8x32xf32>
    %159 = tpu.matmul %156, %158, %cst_114 {dimension_numbers = #tpu.dot_dimension_numbers<[1], [0], [0], [1], [0, 0, 1, 1], [], []>} : vector<8x64xf32>, vector<64x32xf32>, vector<8x32xf32> -> vector<8x32xf32>
    %c0_115 = arith.constant 0 : index
    %c0_116 = arith.constant 0 : index
    %c0_117 = arith.constant 0 : index
    %160 = vector.load %arg18[%c0_115, %c0_116, %c0_117] : memref<2x1x32xf32, #tpu.memory_space<vmem>>, vector<1x1x32xf32>
    %161 = vector.shape_cast %160 : vector<1x1x32xf32> to vector<1x32xf32>
    %162 = vector.broadcast %161 : vector<1x32xf32> to vector<8x32xf32>
    %163 = arith.addf %159, %162 : vector<8x32xf32>
    %164 = arith.addf %136, %163 : vector<8x32xf32>
    %c0_118 = arith.constant 0 : index
    %c0_119 = arith.constant 0 : index
    %c0_120 = arith.constant 0 : index
    %165 = vector.load %arg19[%c0_118, %c0_119, %c0_120] : memref<2x1x32xf32, #tpu.memory_space<vmem>>, vector<1x1x32xf32>
    %166 = vector.shape_cast %165 : vector<1x1x32xf32> to vector<1x32xf32>
    %c0_121 = arith.constant 0 : index
    %c0_122 = arith.constant 0 : index
    %c0_123 = arith.constant 0 : index
    %167 = vector.load %arg20[%c0_121, %c0_122, %c0_123] : memref<2x1x32xf32, #tpu.memory_space<vmem>>, vector<1x1x32xf32>
    %168 = vector.shape_cast %167 : vector<1x1x32xf32> to vector<1x32xf32>
    %cst_124 = arith.constant dense<0.000000e+00> : vector<8xf32>
    %169 = vector.multi_reduction <add>, %164, %cst_124 [1] : vector<8x32xf32> to vector<8xf32>
    %170 = vector.shape_cast %169 : vector<8xf32> to vector<8x1xf32>
    %cst_125 = arith.constant 3.200000e+01 : f32
    %171 = vector.broadcast %cst_125 : f32 to vector<8x1xf32>
    %172 = arith.divf %170, %171 : vector<8x1xf32>
    %173 = vector.broadcast %172 : vector<8x1xf32> to vector<8x32xf32>
    %174 = arith.subf %164, %173 : vector<8x32xf32>
    %175 = arith.mulf %174, %174 : vector<8x32xf32>
    %cst_126 = arith.constant dense<0.000000e+00> : vector<8xf32>
    %176 = vector.multi_reduction <add>, %175, %cst_126 [1] : vector<8x32xf32> to vector<8xf32>
    %177 = vector.shape_cast %176 : vector<8xf32> to vector<8x1xf32>
    %cst_127 = arith.constant 3.200000e+01 : f32
    %178 = vector.broadcast %cst_127 : f32 to vector<8x1xf32>
    %179 = arith.divf %177, %178 : vector<8x1xf32>
    %cst_128 = arith.constant 9.99999996E-13 : f32
    %180 = vector.broadcast %cst_128 : f32 to vector<8x1xf32>
    %181 = arith.addf %179, %180 : vector<8x1xf32>
    %182 = math.rsqrt %181 : vector<8x1xf32>
    %183 = vector.broadcast %182 : vector<8x1xf32> to vector<8x32xf32>
    %184 = arith.mulf %174, %183 : vector<8x32xf32>
    %185 = vector.broadcast %166 : vector<1x32xf32> to vector<8x32xf32>
    %186 = arith.mulf %184, %185 : vector<8x32xf32>
    %187 = vector.broadcast %168 : vector<1x32xf32> to vector<8x32xf32>
    %188 = arith.addf %186, %187 : vector<8x32xf32>
    %cst_129 = arith.constant 0.000000e+00 : f32
    %189 = vector.broadcast %cst_129 : f32 to vector<8x32xf32>
    %c1_130 = arith.constant 1 : index
    %c0_131 = arith.constant 0 : index
    %c0_132 = arith.constant 0 : index
    %c0_133 = arith.constant 0 : index
    %190 = vector.load %arg5[%c1_130, %c0_131, %c0_132, %c0_133] : memref<2x2x32x16xf32, #tpu.memory_space<vmem>>, vector<1x1x32x16xf32>
    %191 = vector.shape_cast %190 : vector<1x1x32x16xf32> to vector<32x16xf32>
    %cst_134 = arith.constant dense<0.000000e+00> : vector<8x16xf32>
    %192 = tpu.matmul %188, %191, %cst_134 {dimension_numbers = #tpu.dot_dimension_numbers<[1], [0], [0], [1], [0, 0, 1, 1], [], []>} : vector<8x32xf32>, vector<32x16xf32>, vector<8x16xf32> -> vector<8x16xf32>
    %c1_135 = arith.constant 1 : index
    %c0_136 = arith.constant 0 : index
    %c0_137 = arith.constant 0 : index
    %c0_138 = arith.constant 0 : index
    %193 = vector.load %arg6[%c1_135, %c0_136, %c0_137, %c0_138] : memref<2x2x1x16xf32, #tpu.memory_space<vmem>>, vector<1x1x1x16xf32>
    %194 = vector.shape_cast %193 : vector<1x1x1x16xf32> to vector<1x16xf32>
    %195 = vector.broadcast %194 : vector<1x16xf32> to vector<8x16xf32>
    %196 = arith.addf %192, %195 : vector<8x16xf32>
    %c1_139 = arith.constant 1 : index
    %c0_140 = arith.constant 0 : index
    %c0_141 = arith.constant 0 : index
    %c0_142 = arith.constant 0 : index
    %197 = vector.load %arg7[%c1_139, %c0_140, %c0_141, %c0_142] : memref<2x2x32x16xf32, #tpu.memory_space<vmem>>, vector<1x1x32x16xf32>
    %198 = vector.shape_cast %197 : vector<1x1x32x16xf32> to vector<32x16xf32>
    %cst_143 = arith.constant dense<0.000000e+00> : vector<8x16xf32>
    %199 = tpu.matmul %188, %198, %cst_143 {dimension_numbers = #tpu.dot_dimension_numbers<[1], [0], [0], [1], [0, 0, 1, 1], [], []>} : vector<8x32xf32>, vector<32x16xf32>, vector<8x16xf32> -> vector<8x16xf32>
    %c1_144 = arith.constant 1 : index
    %c0_145 = arith.constant 0 : index
    %c0_146 = arith.constant 0 : index
    %c0_147 = arith.constant 0 : index
    %200 = vector.load %arg8[%c1_144, %c0_145, %c0_146, %c0_147] : memref<2x2x1x16xf32, #tpu.memory_space<vmem>>, vector<1x1x1x16xf32>
    %201 = vector.shape_cast %200 : vector<1x1x1x16xf32> to vector<1x16xf32>
    %202 = vector.broadcast %201 : vector<1x16xf32> to vector<8x16xf32>
    %203 = arith.addf %199, %202 : vector<8x16xf32>
    %c1_148 = arith.constant 1 : index
    %c0_149 = arith.constant 0 : index
    %c0_150 = arith.constant 0 : index
    %c0_151 = arith.constant 0 : index
    %204 = vector.load %arg9[%c1_148, %c0_149, %c0_150, %c0_151] : memref<2x2x32x16xf32, #tpu.memory_space<vmem>>, vector<1x1x32x16xf32>
    %205 = vector.shape_cast %204 : vector<1x1x32x16xf32> to vector<32x16xf32>
    %cst_152 = arith.constant dense<0.000000e+00> : vector<8x16xf32>
    %206 = tpu.matmul %188, %205, %cst_152 {dimension_numbers = #tpu.dot_dimension_numbers<[1], [0], [0], [1], [0, 0, 1, 1], [], []>} : vector<8x32xf32>, vector<32x16xf32>, vector<8x16xf32> -> vector<8x16xf32>
    %c1_153 = arith.constant 1 : index
    %c0_154 = arith.constant 0 : index
    %c0_155 = arith.constant 0 : index
    %c0_156 = arith.constant 0 : index
    %207 = vector.load %arg10[%c1_153, %c0_154, %c0_155, %c0_156] : memref<2x2x1x16xf32, #tpu.memory_space<vmem>>, vector<1x1x1x16xf32>
    %208 = vector.shape_cast %207 : vector<1x1x1x16xf32> to vector<1x16xf32>
    %209 = vector.broadcast %208 : vector<1x16xf32> to vector<8x16xf32>
    %210 = arith.addf %206, %209 : vector<8x16xf32>
    %cst_157 = arith.constant dense<0.000000e+00> : vector<8x8xf32>
    %211 = tpu.matmul %196, %203, %cst_157 {dimension_numbers = #tpu.dot_dimension_numbers<[1], [1], [0], [0], [0, 0, 1, 0], [], []>} : vector<8x16xf32>, vector<8x16xf32>, vector<8x8xf32> -> vector<8x8xf32>
    %cst_158 = arith.constant 2.500000e-01 : f32
    %212 = vector.broadcast %cst_158 : f32 to vector<8x8xf32>
    %213 = arith.mulf %211, %212 : vector<8x8xf32>
    %214 = vector.broadcast %24 : vector<1x8xf32> to vector<8x8xf32>
    %215 = arith.addf %213, %214 : vector<8x8xf32>
    %cst_159 = arith.constant dense<0xFF800000> : vector<8xf32>
    %216 = vector.multi_reduction <maximumf>, %215, %cst_159 [1] : vector<8x8xf32> to vector<8xf32>
    %217 = vector.shape_cast %216 : vector<8xf32> to vector<8x1xf32>
    %218 = vector.broadcast %217 : vector<8x1xf32> to vector<8x8xf32>
    %219 = arith.subf %215, %218 : vector<8x8xf32>
    %220 = math.exp %219 : vector<8x8xf32>
    %cst_160 = arith.constant dense<0.000000e+00> : vector<8xf32>
    %221 = vector.multi_reduction <add>, %220, %cst_160 [1] : vector<8x8xf32> to vector<8xf32>
    %222 = vector.shape_cast %221 : vector<8xf32> to vector<8x1xf32>
    %223 = tpu.reciprocal %222 {approx = true} : vector<8x1xf32> -> vector<8x1xf32>
    %224 = vector.broadcast %223 : vector<8x1xf32> to vector<8x8xf32>
    %225 = arith.mulf %220, %224 : vector<8x8xf32>
    %cst_161 = arith.constant dense<0.000000e+00> : vector<8x16xf32>
    %226 = tpu.matmul %225, %210, %cst_161 {dimension_numbers = #tpu.dot_dimension_numbers<[1], [0], [0], [1], [0, 0, 1, 1], [], []>} : vector<8x8xf32>, vector<8x16xf32>, vector<8x16xf32> -> vector<8x16xf32>
    %c1_162 = arith.constant 1 : index
    %c0_163 = arith.constant 0 : index
    %c0_164 = arith.constant 0 : index
    %c0_165 = arith.constant 0 : index
    %227 = vector.load %arg11[%c1_162, %c0_163, %c0_164, %c0_165] : memref<2x2x16x32xf32, #tpu.memory_space<vmem>>, vector<1x1x16x32xf32>
    %228 = vector.shape_cast %227 : vector<1x1x16x32xf32> to vector<16x32xf32>
    %cst_166 = arith.constant dense<0.000000e+00> : vector<8x32xf32>
    %229 = tpu.matmul %226, %228, %cst_166 {dimension_numbers = #tpu.dot_dimension_numbers<[1], [0], [0], [1], [0, 0, 1, 1], [], []>} : vector<8x16xf32>, vector<16x32xf32>, vector<8x32xf32> -> vector<8x32xf32>
    %230 = arith.addf %189, %229 : vector<8x32xf32>
    %c1_167 = arith.constant 1 : index
    %c1_168 = arith.constant 1 : index
    %c0_169 = arith.constant 0 : index
    %c0_170 = arith.constant 0 : index
    %231 = vector.load %arg5[%c1_167, %c1_168, %c0_169, %c0_170] : memref<2x2x32x16xf32, #tpu.memory_space<vmem>>, vector<1x1x32x16xf32>
    %232 = vector.shape_cast %231 : vector<1x1x32x16xf32> to vector<32x16xf32>
    %cst_171 = arith.constant dense<0.000000e+00> : vector<8x16xf32>
    %233 = tpu.matmul %188, %232, %cst_171 {dimension_numbers = #tpu.dot_dimension_numbers<[1], [0], [0], [1], [0, 0, 1, 1], [], []>} : vector<8x32xf32>, vector<32x16xf32>, vector<8x16xf32> -> vector<8x16xf32>
    %c1_172 = arith.constant 1 : index
    %c1_173 = arith.constant 1 : index
    %c0_174 = arith.constant 0 : index
    %c0_175 = arith.constant 0 : index
    %234 = vector.load %arg6[%c1_172, %c1_173, %c0_174, %c0_175] : memref<2x2x1x16xf32, #tpu.memory_space<vmem>>, vector<1x1x1x16xf32>
    %235 = vector.shape_cast %234 : vector<1x1x1x16xf32> to vector<1x16xf32>
    %236 = vector.broadcast %235 : vector<1x16xf32> to vector<8x16xf32>
    %237 = arith.addf %233, %236 : vector<8x16xf32>
    %c1_176 = arith.constant 1 : index
    %c1_177 = arith.constant 1 : index
    %c0_178 = arith.constant 0 : index
    %c0_179 = arith.constant 0 : index
    %238 = vector.load %arg7[%c1_176, %c1_177, %c0_178, %c0_179] : memref<2x2x32x16xf32, #tpu.memory_space<vmem>>, vector<1x1x32x16xf32>
    %239 = vector.shape_cast %238 : vector<1x1x32x16xf32> to vector<32x16xf32>
    %cst_180 = arith.constant dense<0.000000e+00> : vector<8x16xf32>
    %240 = tpu.matmul %188, %239, %cst_180 {dimension_numbers = #tpu.dot_dimension_numbers<[1], [0], [0], [1], [0, 0, 1, 1], [], []>} : vector<8x32xf32>, vector<32x16xf32>, vector<8x16xf32> -> vector<8x16xf32>
    %c1_181 = arith.constant 1 : index
    %c1_182 = arith.constant 1 : index
    %c0_183 = arith.constant 0 : index
    %c0_184 = arith.constant 0 : index
    %241 = vector.load %arg8[%c1_181, %c1_182, %c0_183, %c0_184] : memref<2x2x1x16xf32, #tpu.memory_space<vmem>>, vector<1x1x1x16xf32>
    %242 = vector.shape_cast %241 : vector<1x1x1x16xf32> to vector<1x16xf32>
    %243 = vector.broadcast %242 : vector<1x16xf32> to vector<8x16xf32>
    %244 = arith.addf %240, %243 : vector<8x16xf32>
    %c1_185 = arith.constant 1 : index
    %c1_186 = arith.constant 1 : index
    %c0_187 = arith.constant 0 : index
    %c0_188 = arith.constant 0 : index
    %245 = vector.load %arg9[%c1_185, %c1_186, %c0_187, %c0_188] : memref<2x2x32x16xf32, #tpu.memory_space<vmem>>, vector<1x1x32x16xf32>
    %246 = vector.shape_cast %245 : vector<1x1x32x16xf32> to vector<32x16xf32>
    %cst_189 = arith.constant dense<0.000000e+00> : vector<8x16xf32>
    %247 = tpu.matmul %188, %246, %cst_189 {dimension_numbers = #tpu.dot_dimension_numbers<[1], [0], [0], [1], [0, 0, 1, 1], [], []>} : vector<8x32xf32>, vector<32x16xf32>, vector<8x16xf32> -> vector<8x16xf32>
    %c1_190 = arith.constant 1 : index
    %c1_191 = arith.constant 1 : index
    %c0_192 = arith.constant 0 : index
    %c0_193 = arith.constant 0 : index
    %248 = vector.load %arg10[%c1_190, %c1_191, %c0_192, %c0_193] : memref<2x2x1x16xf32, #tpu.memory_space<vmem>>, vector<1x1x1x16xf32>
    %249 = vector.shape_cast %248 : vector<1x1x1x16xf32> to vector<1x16xf32>
    %250 = vector.broadcast %249 : vector<1x16xf32> to vector<8x16xf32>
    %251 = arith.addf %247, %250 : vector<8x16xf32>
    %cst_194 = arith.constant dense<0.000000e+00> : vector<8x8xf32>
    %252 = tpu.matmul %237, %244, %cst_194 {dimension_numbers = #tpu.dot_dimension_numbers<[1], [1], [0], [0], [0, 0, 1, 0], [], []>} : vector<8x16xf32>, vector<8x16xf32>, vector<8x8xf32> -> vector<8x8xf32>
    %cst_195 = arith.constant 2.500000e-01 : f32
    %253 = vector.broadcast %cst_195 : f32 to vector<8x8xf32>
    %254 = arith.mulf %252, %253 : vector<8x8xf32>
    %255 = vector.broadcast %24 : vector<1x8xf32> to vector<8x8xf32>
    %256 = arith.addf %254, %255 : vector<8x8xf32>
    %cst_196 = arith.constant dense<0xFF800000> : vector<8xf32>
    %257 = vector.multi_reduction <maximumf>, %256, %cst_196 [1] : vector<8x8xf32> to vector<8xf32>
    %258 = vector.shape_cast %257 : vector<8xf32> to vector<8x1xf32>
    %259 = vector.broadcast %258 : vector<8x1xf32> to vector<8x8xf32>
    %260 = arith.subf %256, %259 : vector<8x8xf32>
    %261 = math.exp %260 : vector<8x8xf32>
    %cst_197 = arith.constant dense<0.000000e+00> : vector<8xf32>
    %262 = vector.multi_reduction <add>, %261, %cst_197 [1] : vector<8x8xf32> to vector<8xf32>
    %263 = vector.shape_cast %262 : vector<8xf32> to vector<8x1xf32>
    %264 = tpu.reciprocal %263 {approx = true} : vector<8x1xf32> -> vector<8x1xf32>
    %265 = vector.broadcast %264 : vector<8x1xf32> to vector<8x8xf32>
    %266 = arith.mulf %261, %265 : vector<8x8xf32>
    %cst_198 = arith.constant dense<0.000000e+00> : vector<8x16xf32>
    %267 = tpu.matmul %266, %251, %cst_198 {dimension_numbers = #tpu.dot_dimension_numbers<[1], [0], [0], [1], [0, 0, 1, 1], [], []>} : vector<8x8xf32>, vector<8x16xf32>, vector<8x16xf32> -> vector<8x16xf32>
    %c1_199 = arith.constant 1 : index
    %c1_200 = arith.constant 1 : index
    %c0_201 = arith.constant 0 : index
    %c0_202 = arith.constant 0 : index
    %268 = vector.load %arg11[%c1_199, %c1_200, %c0_201, %c0_202] : memref<2x2x16x32xf32, #tpu.memory_space<vmem>>, vector<1x1x16x32xf32>
    %269 = vector.shape_cast %268 : vector<1x1x16x32xf32> to vector<16x32xf32>
    %cst_203 = arith.constant dense<0.000000e+00> : vector<8x32xf32>
    %270 = tpu.matmul %267, %269, %cst_203 {dimension_numbers = #tpu.dot_dimension_numbers<[1], [0], [0], [1], [0, 0, 1, 1], [], []>} : vector<8x16xf32>, vector<16x32xf32>, vector<8x32xf32> -> vector<8x32xf32>
    %271 = arith.addf %230, %270 : vector<8x32xf32>
    %272 = arith.addf %188, %271 : vector<8x32xf32>
    %c1_204 = arith.constant 1 : index
    %c0_205 = arith.constant 0 : index
    %c0_206 = arith.constant 0 : index
    %273 = vector.load %arg12[%c1_204, %c0_205, %c0_206] : memref<2x1x32xf32, #tpu.memory_space<vmem>>, vector<1x1x32xf32>
    %274 = vector.shape_cast %273 : vector<1x1x32xf32> to vector<1x32xf32>
    %275 = vector.broadcast %274 : vector<1x32xf32> to vector<8x32xf32>
    %276 = arith.addf %272, %275 : vector<8x32xf32>
    %c1_207 = arith.constant 1 : index
    %c0_208 = arith.constant 0 : index
    %c0_209 = arith.constant 0 : index
    %277 = vector.load %arg13[%c1_207, %c0_208, %c0_209] : memref<2x1x32xf32, #tpu.memory_space<vmem>>, vector<1x1x32xf32>
    %278 = vector.shape_cast %277 : vector<1x1x32xf32> to vector<1x32xf32>
    %c1_210 = arith.constant 1 : index
    %c0_211 = arith.constant 0 : index
    %c0_212 = arith.constant 0 : index
    %279 = vector.load %arg14[%c1_210, %c0_211, %c0_212] : memref<2x1x32xf32, #tpu.memory_space<vmem>>, vector<1x1x32xf32>
    %280 = vector.shape_cast %279 : vector<1x1x32xf32> to vector<1x32xf32>
    %cst_213 = arith.constant dense<0.000000e+00> : vector<8xf32>
    %281 = vector.multi_reduction <add>, %276, %cst_213 [1] : vector<8x32xf32> to vector<8xf32>
    %282 = vector.shape_cast %281 : vector<8xf32> to vector<8x1xf32>
    %cst_214 = arith.constant 3.200000e+01 : f32
    %283 = vector.broadcast %cst_214 : f32 to vector<8x1xf32>
    %284 = arith.divf %282, %283 : vector<8x1xf32>
    %285 = vector.broadcast %284 : vector<8x1xf32> to vector<8x32xf32>
    %286 = arith.subf %276, %285 : vector<8x32xf32>
    %287 = arith.mulf %286, %286 : vector<8x32xf32>
    %cst_215 = arith.constant dense<0.000000e+00> : vector<8xf32>
    %288 = vector.multi_reduction <add>, %287, %cst_215 [1] : vector<8x32xf32> to vector<8xf32>
    %289 = vector.shape_cast %288 : vector<8xf32> to vector<8x1xf32>
    %cst_216 = arith.constant 3.200000e+01 : f32
    %290 = vector.broadcast %cst_216 : f32 to vector<8x1xf32>
    %291 = arith.divf %289, %290 : vector<8x1xf32>
    %cst_217 = arith.constant 9.99999996E-13 : f32
    %292 = vector.broadcast %cst_217 : f32 to vector<8x1xf32>
    %293 = arith.addf %291, %292 : vector<8x1xf32>
    %294 = math.rsqrt %293 : vector<8x1xf32>
    %295 = vector.broadcast %294 : vector<8x1xf32> to vector<8x32xf32>
    %296 = arith.mulf %286, %295 : vector<8x32xf32>
    %297 = vector.broadcast %278 : vector<1x32xf32> to vector<8x32xf32>
    %298 = arith.mulf %296, %297 : vector<8x32xf32>
    %299 = vector.broadcast %280 : vector<1x32xf32> to vector<8x32xf32>
    %300 = arith.addf %298, %299 : vector<8x32xf32>
    %c1_218 = arith.constant 1 : index
    %c0_219 = arith.constant 0 : index
    %c0_220 = arith.constant 0 : index
    %301 = vector.load %arg15[%c1_218, %c0_219, %c0_220] : memref<2x32x64xf32, #tpu.memory_space<vmem>>, vector<1x32x64xf32>
    %302 = vector.shape_cast %301 : vector<1x32x64xf32> to vector<32x64xf32>
    %cst_221 = arith.constant dense<0.000000e+00> : vector<8x64xf32>
    %303 = tpu.matmul %300, %302, %cst_221 {dimension_numbers = #tpu.dot_dimension_numbers<[1], [0], [0], [1], [0, 0, 1, 1], [], []>} : vector<8x32xf32>, vector<32x64xf32>, vector<8x64xf32> -> vector<8x64xf32>
    %c1_222 = arith.constant 1 : index
    %c0_223 = arith.constant 0 : index
    %c0_224 = arith.constant 0 : index
    %304 = vector.load %arg16[%c1_222, %c0_223, %c0_224] : memref<2x1x64xf32, #tpu.memory_space<vmem>>, vector<1x1x64xf32>
    %305 = vector.shape_cast %304 : vector<1x1x64xf32> to vector<1x64xf32>
    %306 = vector.broadcast %305 : vector<1x64xf32> to vector<8x64xf32>
    %307 = arith.addf %303, %306 : vector<8x64xf32>
    %cst_225 = arith.constant 5.000000e-01 : f32
    %308 = vector.broadcast %cst_225 : f32 to vector<8x64xf32>
    %309 = arith.mulf %308, %307 : vector<8x64xf32>
    %cst_226 = arith.constant 4.471500e-02 : f32
    %310 = vector.broadcast %cst_226 : f32 to vector<8x64xf32>
    %311 = arith.mulf %310, %307 : vector<8x64xf32>
    %312 = arith.mulf %311, %307 : vector<8x64xf32>
    %313 = arith.mulf %312, %307 : vector<8x64xf32>
    %314 = arith.addf %307, %313 : vector<8x64xf32>
    %cst_227 = arith.constant 0.797884583 : f32
    %315 = vector.broadcast %cst_227 : f32 to vector<8x64xf32>
    %316 = arith.mulf %315, %314 : vector<8x64xf32>
    %317 = math.tanh %316 : vector<8x64xf32>
    %cst_228 = arith.constant 1.000000e+00 : f32
    %318 = vector.broadcast %cst_228 : f32 to vector<8x64xf32>
    %319 = arith.addf %318, %317 : vector<8x64xf32>
    %320 = arith.mulf %309, %319 : vector<8x64xf32>
    %c1_229 = arith.constant 1 : index
    %c0_230 = arith.constant 0 : index
    %c0_231 = arith.constant 0 : index
    %321 = vector.load %arg17[%c1_229, %c0_230, %c0_231] : memref<2x64x32xf32, #tpu.memory_space<vmem>>, vector<1x64x32xf32>
    %322 = vector.shape_cast %321 : vector<1x64x32xf32> to vector<64x32xf32>
    %cst_232 = arith.constant dense<0.000000e+00> : vector<8x32xf32>
    %323 = tpu.matmul %320, %322, %cst_232 {dimension_numbers = #tpu.dot_dimension_numbers<[1], [0], [0], [1], [0, 0, 1, 1], [], []>} : vector<8x64xf32>, vector<64x32xf32>, vector<8x32xf32> -> vector<8x32xf32>
    %c1_233 = arith.constant 1 : index
    %c0_234 = arith.constant 0 : index
    %c0_235 = arith.constant 0 : index
    %324 = vector.load %arg18[%c1_233, %c0_234, %c0_235] : memref<2x1x32xf32, #tpu.memory_space<vmem>>, vector<1x1x32xf32>
    %325 = vector.shape_cast %324 : vector<1x1x32xf32> to vector<1x32xf32>
    %326 = vector.broadcast %325 : vector<1x32xf32> to vector<8x32xf32>
    %327 = arith.addf %323, %326 : vector<8x32xf32>
    %328 = arith.addf %300, %327 : vector<8x32xf32>
    %c1_236 = arith.constant 1 : index
    %c0_237 = arith.constant 0 : index
    %c0_238 = arith.constant 0 : index
    %329 = vector.load %arg19[%c1_236, %c0_237, %c0_238] : memref<2x1x32xf32, #tpu.memory_space<vmem>>, vector<1x1x32xf32>
    %330 = vector.shape_cast %329 : vector<1x1x32xf32> to vector<1x32xf32>
    %c1_239 = arith.constant 1 : index
    %c0_240 = arith.constant 0 : index
    %c0_241 = arith.constant 0 : index
    %331 = vector.load %arg20[%c1_239, %c0_240, %c0_241] : memref<2x1x32xf32, #tpu.memory_space<vmem>>, vector<1x1x32xf32>
    %332 = vector.shape_cast %331 : vector<1x1x32xf32> to vector<1x32xf32>
    %cst_242 = arith.constant dense<0.000000e+00> : vector<8xf32>
    %333 = vector.multi_reduction <add>, %328, %cst_242 [1] : vector<8x32xf32> to vector<8xf32>
    %334 = vector.shape_cast %333 : vector<8xf32> to vector<8x1xf32>
    %cst_243 = arith.constant 3.200000e+01 : f32
    %335 = vector.broadcast %cst_243 : f32 to vector<8x1xf32>
    %336 = arith.divf %334, %335 : vector<8x1xf32>
    %337 = vector.broadcast %336 : vector<8x1xf32> to vector<8x32xf32>
    %338 = arith.subf %328, %337 : vector<8x32xf32>
    %339 = arith.mulf %338, %338 : vector<8x32xf32>
    %cst_244 = arith.constant dense<0.000000e+00> : vector<8xf32>
    %340 = vector.multi_reduction <add>, %339, %cst_244 [1] : vector<8x32xf32> to vector<8xf32>
    %341 = vector.shape_cast %340 : vector<8xf32> to vector<8x1xf32>
    %cst_245 = arith.constant 3.200000e+01 : f32
    %342 = vector.broadcast %cst_245 : f32 to vector<8x1xf32>
    %343 = arith.divf %341, %342 : vector<8x1xf32>
    %cst_246 = arith.constant 9.99999996E-13 : f32
    %344 = vector.broadcast %cst_246 : f32 to vector<8x1xf32>
    %345 = arith.addf %343, %344 : vector<8x1xf32>
    %346 = math.rsqrt %345 : vector<8x1xf32>
    %347 = vector.broadcast %346 : vector<8x1xf32> to vector<8x32xf32>
    %348 = arith.mulf %338, %347 : vector<8x32xf32>
    %349 = vector.broadcast %330 : vector<1x32xf32> to vector<8x32xf32>
    %350 = arith.mulf %348, %349 : vector<8x32xf32>
    %351 = vector.broadcast %332 : vector<1x32xf32> to vector<8x32xf32>
    %352 = arith.addf %350, %351 : vector<8x32xf32>
    %353 = vector.extract_strided_slice %352 {offsets = [0, 0], sizes = [1, 32], strides = [1, 1]} : vector<8x32xf32> to vector<1x32xf32>
    %c0_247 = arith.constant 0 : index
    %c0_248 = arith.constant 0 : index
    %354 = vector.load %arg21[%c0_247, %c0_248] : memref<32x128xf32, #tpu.memory_space<vmem>>, vector<32x128xf32>
    %cst_249 = arith.constant dense<0.000000e+00> : vector<1x128xf32>
    %355 = tpu.matmul %353, %354, %cst_249 {dimension_numbers = #tpu.dot_dimension_numbers<[1], [0], [0], [1], [0, 0, 1, 1], [], []>} : vector<1x32xf32>, vector<32x128xf32>, vector<1x128xf32> -> vector<1x128xf32>
    %c0_250 = arith.constant 0 : index
    %c0_251 = arith.constant 0 : index
    %356 = vector.load %arg22[%c0_250, %c0_251] : memref<1x128xf32, #tpu.memory_space<vmem>>, vector<1x128xf32>
    %357 = arith.addf %355, %356 : vector<1x128xf32>
    %cst_252 = arith.constant 0.000000e+00 : f32
    %358 = vector.broadcast %cst_252 : f32 to vector<1x128xf32>
    %359 = arith.maximumf %357, %358 : vector<1x128xf32>
    %c0_253 = arith.constant 0 : index
    %c0_254 = arith.constant 0 : index
    %c0_255 = arith.constant 0 : index
    %360 = vector.load %arg23[%c0_253, %c0_254, %c0_255] : memref<5x128x128xf32, #tpu.memory_space<vmem>>, vector<1x128x128xf32>
    %361 = vector.shape_cast %360 : vector<1x128x128xf32> to vector<128x128xf32>
    %cst_256 = arith.constant dense<0.000000e+00> : vector<1x128xf32>
    %362 = tpu.matmul %359, %361, %cst_256 {dimension_numbers = #tpu.dot_dimension_numbers<[1], [0], [0], [1], [0, 0, 1, 1], [], []>} : vector<1x128xf32>, vector<128x128xf32>, vector<1x128xf32> -> vector<1x128xf32>
    %c0_257 = arith.constant 0 : index
    %c0_258 = arith.constant 0 : index
    %c0_259 = arith.constant 0 : index
    %363 = vector.load %arg24[%c0_257, %c0_258, %c0_259] : memref<5x1x128xf32, #tpu.memory_space<vmem>>, vector<1x1x128xf32>
    %364 = vector.shape_cast %363 : vector<1x1x128xf32> to vector<1x128xf32>
    %365 = arith.addf %362, %364 : vector<1x128xf32>
    %cst_260 = arith.constant 0.000000e+00 : f32
    %366 = vector.broadcast %cst_260 : f32 to vector<1x128xf32>
    %367 = arith.maximumf %365, %366 : vector<1x128xf32>
    %c1_261 = arith.constant 1 : index
    %c0_262 = arith.constant 0 : index
    %c0_263 = arith.constant 0 : index
    %368 = vector.load %arg23[%c1_261, %c0_262, %c0_263] : memref<5x128x128xf32, #tpu.memory_space<vmem>>, vector<1x128x128xf32>
    %369 = vector.shape_cast %368 : vector<1x128x128xf32> to vector<128x128xf32>
    %cst_264 = arith.constant dense<0.000000e+00> : vector<1x128xf32>
    %370 = tpu.matmul %367, %369, %cst_264 {dimension_numbers = #tpu.dot_dimension_numbers<[1], [0], [0], [1], [0, 0, 1, 1], [], []>} : vector<1x128xf32>, vector<128x128xf32>, vector<1x128xf32> -> vector<1x128xf32>
    %c1_265 = arith.constant 1 : index
    %c0_266 = arith.constant 0 : index
    %c0_267 = arith.constant 0 : index
    %371 = vector.load %arg24[%c1_265, %c0_266, %c0_267] : memref<5x1x128xf32, #tpu.memory_space<vmem>>, vector<1x1x128xf32>
    %372 = vector.shape_cast %371 : vector<1x1x128xf32> to vector<1x128xf32>
    %373 = arith.addf %370, %372 : vector<1x128xf32>
    %cst_268 = arith.constant 0.000000e+00 : f32
    %374 = vector.broadcast %cst_268 : f32 to vector<1x128xf32>
    %375 = arith.maximumf %373, %374 : vector<1x128xf32>
    %c2 = arith.constant 2 : index
    %c0_269 = arith.constant 0 : index
    %c0_270 = arith.constant 0 : index
    %376 = vector.load %arg23[%c2, %c0_269, %c0_270] : memref<5x128x128xf32, #tpu.memory_space<vmem>>, vector<1x128x128xf32>
    %377 = vector.shape_cast %376 : vector<1x128x128xf32> to vector<128x128xf32>
    %cst_271 = arith.constant dense<0.000000e+00> : vector<1x128xf32>
    %378 = tpu.matmul %375, %377, %cst_271 {dimension_numbers = #tpu.dot_dimension_numbers<[1], [0], [0], [1], [0, 0, 1, 1], [], []>} : vector<1x128xf32>, vector<128x128xf32>, vector<1x128xf32> -> vector<1x128xf32>
    %c2_272 = arith.constant 2 : index
    %c0_273 = arith.constant 0 : index
    %c0_274 = arith.constant 0 : index
    %379 = vector.load %arg24[%c2_272, %c0_273, %c0_274] : memref<5x1x128xf32, #tpu.memory_space<vmem>>, vector<1x1x128xf32>
    %380 = vector.shape_cast %379 : vector<1x1x128xf32> to vector<1x128xf32>
    %381 = arith.addf %378, %380 : vector<1x128xf32>
    %cst_275 = arith.constant 0.000000e+00 : f32
    %382 = vector.broadcast %cst_275 : f32 to vector<1x128xf32>
    %383 = arith.maximumf %381, %382 : vector<1x128xf32>
    %c3 = arith.constant 3 : index
    %c0_276 = arith.constant 0 : index
    %c0_277 = arith.constant 0 : index
    %384 = vector.load %arg23[%c3, %c0_276, %c0_277] : memref<5x128x128xf32, #tpu.memory_space<vmem>>, vector<1x128x128xf32>
    %385 = vector.shape_cast %384 : vector<1x128x128xf32> to vector<128x128xf32>
    %cst_278 = arith.constant dense<0.000000e+00> : vector<1x128xf32>
    %386 = tpu.matmul %383, %385, %cst_278 {dimension_numbers = #tpu.dot_dimension_numbers<[1], [0], [0], [1], [0, 0, 1, 1], [], []>} : vector<1x128xf32>, vector<128x128xf32>, vector<1x128xf32> -> vector<1x128xf32>
    %c3_279 = arith.constant 3 : index
    %c0_280 = arith.constant 0 : index
    %c0_281 = arith.constant 0 : index
    %387 = vector.load %arg24[%c3_279, %c0_280, %c0_281] : memref<5x1x128xf32, #tpu.memory_space<vmem>>, vector<1x1x128xf32>
    %388 = vector.shape_cast %387 : vector<1x1x128xf32> to vector<1x128xf32>
    %389 = arith.addf %386, %388 : vector<1x128xf32>
    %cst_282 = arith.constant 0.000000e+00 : f32
    %390 = vector.broadcast %cst_282 : f32 to vector<1x128xf32>
    %391 = arith.maximumf %389, %390 : vector<1x128xf32>
    %c4 = arith.constant 4 : index
    %c0_283 = arith.constant 0 : index
    %c0_284 = arith.constant 0 : index
    %392 = vector.load %arg23[%c4, %c0_283, %c0_284] : memref<5x128x128xf32, #tpu.memory_space<vmem>>, vector<1x128x128xf32>
    %393 = vector.shape_cast %392 : vector<1x128x128xf32> to vector<128x128xf32>
    %cst_285 = arith.constant dense<0.000000e+00> : vector<1x128xf32>
    %394 = tpu.matmul %391, %393, %cst_285 {dimension_numbers = #tpu.dot_dimension_numbers<[1], [0], [0], [1], [0, 0, 1, 1], [], []>} : vector<1x128xf32>, vector<128x128xf32>, vector<1x128xf32> -> vector<1x128xf32>
    %c4_286 = arith.constant 4 : index
    %c0_287 = arith.constant 0 : index
    %c0_288 = arith.constant 0 : index
    %395 = vector.load %arg24[%c4_286, %c0_287, %c0_288] : memref<5x1x128xf32, #tpu.memory_space<vmem>>, vector<1x1x128xf32>
    %396 = vector.shape_cast %395 : vector<1x1x128xf32> to vector<1x128xf32>
    %397 = arith.addf %394, %396 : vector<1x128xf32>
    %c0_289 = arith.constant 0 : index
    %c0_290 = arith.constant 0 : index
    %c0_291 = arith.constant 0 : index
    %398 = vector.load %arg25[%c0_289, %c0_290, %c0_291] : memref<1x1x128xf32, #tpu.memory_space<vmem>>, vector<1x1x128xf32>
    %399 = vector.shape_cast %398 : vector<1x1x128xf32> to vector<1x128xf32>
    %400 = vector.shape_cast %397 : vector<1x128xf32> to vector<1x1x128xf32>
    tpu.vector_store %arg25[%c0_289, %c0_290, %c0_291], %400 {strides = array<i32>} : memref<1x1x128xf32, #tpu.memory_space<vmem>>, vector<1x1x128xf32>,
    return
  }
  func.func @transform_0(%arg0: i32) -> (i32, i32) {
    %c0_i32 = arith.constant 0 : i32
    %c0_i32_0 = arith.constant 0 : i32
    return %arg0, %c0_i32 : i32, i32
  }
  func.func @transform_1(%arg0: i32) -> (i32, i32, i32) {
    %c0_i32 = arith.constant 0 : i32
    %c0_i32_0 = arith.constant 0 : i32
    %c0_i32_1 = arith.constant 0 : i32
    return %arg0, %c0_i32, %c0_i32_0 : i32, i32, i32
  }
  func.func @transform_2(%arg0: i32) -> (i32, i32) {
    %c0_i32 = arith.constant 0 : i32
    %c0_i32_0 = arith.constant 0 : i32
    %c0_i32_1 = arith.constant 0 : i32
    return %c0_i32, %c0_i32_0 : i32, i32
  }
  func.func @transform_3(%arg0: i32) -> (i32, i32) {
    %c0_i32 = arith.constant 0 : i32
    %c0_i32_0 = arith.constant 0 : i32
    %c0_i32_1 = arith.constant 0 : i32
    return %c0_i32, %c0_i32_0 : i32, i32
  }
  func.func @transform_4(%arg0: i32) -> (i32, i32, i32, i32) {
    %c0_i32 = arith.constant 0 : i32
    %c0_i32_0 = arith.constant 0 : i32
    %c0_i32_1 = arith.constant 0 : i32
    %c0_i32_2 = arith.constant 0 : i32
    %c0_i32_3 = arith.constant 0 : i32
    return %c0_i32, %c0_i32_0, %c0_i32_1, %c0_i32_2 : i32, i32, i32, i32
  }
  func.func @transform_5(%arg0: i32) -> (i32, i32, i32, i32) {
    %c0_i32 = arith.constant 0 : i32
    %c0_i32_0 = arith.constant 0 : i32
    %c0_i32_1 = arith.constant 0 : i32
    %c0_i32_2 = arith.constant 0 : i32
    %c0_i32_3 = arith.constant 0 : i32
    return %c0_i32, %c0_i32_0, %c0_i32_1, %c0_i32_2 : i32, i32, i32, i32
  }
  func.func @transform_6(%arg0: i32) -> (i32, i32, i32, i32) {
    %c0_i32 = arith.constant 0 : i32
    %c0_i32_0 = arith.constant 0 : i32
    %c0_i32_1 = arith.constant 0 : i32
    %c0_i32_2 = arith.constant 0 : i32
    %c0_i32_3 = arith.constant 0 : i32
    return %c0_i32, %c0_i32_0, %c0_i32_1, %c0_i32_2 : i32, i32, i32, i32
  }
  func.func @transform_7(%arg0: i32) -> (i32, i32, i32, i32) {
    %c0_i32 = arith.constant 0 : i32
    %c0_i32_0 = arith.constant 0 : i32
    %c0_i32_1 = arith.constant 0 : i32
    %c0_i32_2 = arith.constant 0 : i32
    %c0_i32_3 = arith.constant 0 : i32
    return %c0_i32, %c0_i32_0, %c0_i32_1, %c0_i32_2 : i32, i32, i32, i32
  }
  func.func @transform_8(%arg0: i32) -> (i32, i32, i32, i32) {
    %c0_i32 = arith.constant 0 : i32
    %c0_i32_0 = arith.constant 0 : i32
    %c0_i32_1 = arith.constant 0 : i32
    %c0_i32_2 = arith.constant 0 : i32
    %c0_i32_3 = arith.constant 0 : i32
    return %c0_i32, %c0_i32_0, %c0_i32_1, %c0_i32_2 : i32, i32, i32, i32
  }
  func.func @transform_9(%arg0: i32) -> (i32, i32, i32, i32) {
    %c0_i32 = arith.constant 0 : i32
    %c0_i32_0 = arith.constant 0 : i32
    %c0_i32_1 = arith.constant 0 : i32
    %c0_i32_2 = arith.constant 0 : i32
    %c0_i32_3 = arith.constant 0 : i32
    return %c0_i32, %c0_i32_0, %c0_i32_1, %c0_i32_2 : i32, i32, i32, i32
  }
  func.func @transform_10(%arg0: i32) -> (i32, i32, i32, i32) {
    %c0_i32 = arith.constant 0 : i32
    %c0_i32_0 = arith.constant 0 : i32
    %c0_i32_1 = arith.constant 0 : i32
    %c0_i32_2 = arith.constant 0 : i32
    %c0_i32_3 = arith.constant 0 : i32
    return %c0_i32, %c0_i32_0, %c0_i32_1, %c0_i32_2 : i32, i32, i32, i32
  }
  func.func @transform_11(%arg0: i32) -> (i32, i32, i32) {
    %c0_i32 = arith.constant 0 : i32
    %c0_i32_0 = arith.constant 0 : i32
    %c0_i32_1 = arith.constant 0 : i32
    %c0_i32_2 = arith.constant 0 : i32
    return %c0_i32, %c0_i32_0, %c0_i32_1 : i32, i32, i32
  }
  func.func @transform_12(%arg0: i32) -> (i32, i32, i32) {
    %c0_i32 = arith.constant 0 : i32
    %c0_i32_0 = arith.constant 0 : i32
    %c0_i32_1 = arith.constant 0 : i32
    %c0_i32_2 = arith.constant 0 : i32
    return %c0_i32, %c0_i32_0, %c0_i32_1 : i32, i32, i32
  }
  func.func @transform_13(%arg0: i32) -> (i32, i32, i32) {
    %c0_i32 = arith.constant 0 : i32
    %c0_i32_0 = arith.constant 0 : i32
    %c0_i32_1 = arith.constant 0 : i32
    %c0_i32_2 = arith.constant 0 : i32
    return %c0_i32, %c0_i32_0, %c0_i32_1 : i32, i32, i32
  }
  func.func @transform_14(%arg0: i32) -> (i32, i32, i32) {
    %c0_i32 = arith.constant 0 : i32
    %c0_i32_0 = arith.constant 0 : i32
    %c0_i32_1 = arith.constant 0 : i32
    %c0_i32_2 = arith.constant 0 : i32
    return %c0_i32, %c0_i32_0, %c0_i32_1 : i32, i32, i32
  }
  func.func @transform_15(%arg0: i32) -> (i32, i32, i32) {
    %c0_i32 = arith.constant 0 : i32
    %c0_i32_0 = arith.constant 0 : i32
    %c0_i32_1 = arith.constant 0 : i32
    %c0_i32_2 = arith.constant 0 : i32
    return %c0_i32, %c0_i32_0, %c0_i32_1 : i32, i32, i32
  }
  func.func @transform_16(%arg0: i32) -> (i32, i32, i32) {
    %c0_i32 = arith.constant 0 : i32
    %c0_i32_0 = arith.constant 0 : i32
    %c0_i32_1 = arith.constant 0 : i32
    %c0_i32_2 = arith.constant 0 : i32
    return %c0_i32, %c0_i32_0, %c0_i32_1 : i32, i32, i32
  }
  func.func @transform_17(%arg0: i32) -> (i32, i32, i32) {
    %c0_i32 = arith.constant 0 : i32
    %c0_i32_0 = arith.constant 0 : i32
    %c0_i32_1 = arith.constant 0 : i32
    %c0_i32_2 = arith.constant 0 : i32
    return %c0_i32, %c0_i32_0, %c0_i32_1 : i32, i32, i32
  }
  func.func @transform_18(%arg0: i32) -> (i32, i32, i32) {
    %c0_i32 = arith.constant 0 : i32
    %c0_i32_0 = arith.constant 0 : i32
    %c0_i32_1 = arith.constant 0 : i32
    %c0_i32_2 = arith.constant 0 : i32
    return %c0_i32, %c0_i32_0, %c0_i32_1 : i32, i32, i32
  }
  func.func @transform_19(%arg0: i32) -> (i32, i32, i32) {
    %c0_i32 = arith.constant 0 : i32
    %c0_i32_0 = arith.constant 0 : i32
    %c0_i32_1 = arith.constant 0 : i32
    %c0_i32_2 = arith.constant 0 : i32
    return %c0_i32, %c0_i32_0, %c0_i32_1 : i32, i32, i32
  }
  func.func @transform_20(%arg0: i32) -> (i32, i32) {
    %c0_i32 = arith.constant 0 : i32
    %c0_i32_0 = arith.constant 0 : i32
    %c0_i32_1 = arith.constant 0 : i32
    return %c0_i32, %c0_i32_0 : i32, i32
  }
  func.func @transform_21(%arg0: i32) -> (i32, i32) {
    %c0_i32 = arith.constant 0 : i32
    %c0_i32_0 = arith.constant 0 : i32
    %c0_i32_1 = arith.constant 0 : i32
    return %c0_i32, %c0_i32_0 : i32, i32
  }
  func.func @transform_22(%arg0: i32) -> (i32, i32, i32) {
    %c0_i32 = arith.constant 0 : i32
    %c0_i32_0 = arith.constant 0 : i32
    %c0_i32_1 = arith.constant 0 : i32
    %c0_i32_2 = arith.constant 0 : i32
    return %c0_i32, %c0_i32_0, %c0_i32_1 : i32, i32, i32
  }
  func.func @transform_23(%arg0: i32) -> (i32, i32, i32) {
    %c0_i32 = arith.constant 0 : i32
    %c0_i32_0 = arith.constant 0 : i32
    %c0_i32_1 = arith.constant 0 : i32
    %c0_i32_2 = arith.constant 0 : i32
    return %c0_i32, %c0_i32_0, %c0_i32_1 : i32, i32, i32
  }
  func.func @transform_24(%arg0: i32) -> (i32, i32, i32) {
    %c0_i32 = arith.constant 0 : i32
    %c0_i32_0 = arith.constant 0 : i32
    %c0_i32_1 = arith.constant 0 : i32
    return %arg0, %c0_i32, %c0_i32_0 : i32, i32, i32
  }
}

</mosaic_0001>

<bundles_post_ra>
// kernel: transformer_classifier_forward.1
= control target key start
LH: loop header
LB: loop body
LE: loop exit
PB: predicated region body
PF: predicated region fallthrough
CT: control target
= control target key end

     0   :  { %s6154_s0 = inlined_call_operand.vmem [shape: f32[16,32], index: 0, kind: input, shape index: {}]   ;;  %s6155_s1 = inlined_call_operand.vmem [shape: f32[2,1,8], index: 1, kind: input, shape index: {}]   ;;  %s6156_s2 = inlined_call_operand.vmem [shape: f32[1,32], index: 2, kind: input, shape index: {}]   ;;  %s6157_s3 = inlined_call_operand.vmem [shape: f32[1,32], index: 3, kind: input, shape index: {}]   ;;  %s6158_s4 = inlined_call_operand.vmem [shape: f32[2,2,32,16], index: 4, kind: input, shape index: {}]   ;;  %s6159_s5 = inlined_call_operand.vmem [shape: f32[2,2,1,16], index: 5, kind: input, shape index: {}]   ;;  %s6160_s6 = inlined_call_operand.vmem [shape: f32[2,2,32,16], index: 6, kind: input, shape index: {}]   ;;  %s6161_s7 = inlined_call_operand.vmem [shape: f32[2,2,1,16], index: 7, kind: input, shape index: {}]   ;;  %s6162_s8 = inlined_call_operand.vmem [shape: f32[2,2,32,16], index: 8, kind: input, shape index: {}]   ;;  %s6163_s9 = inlined_call_operand.vmem [shape: f32[2,2,1,16], index: 9, kind: input, shape index: {}]   ;;  %s6164_s10 = inlined_call_operand.vmem [shape: f32[2,2,16,32], index: 10, kind: input, shape index: {}]   ;;  %s6165_s11 = inlined_call_operand.vmem [shape: f32[2,1,32], index: 11, kind: input, shape index: {}]   ;;  %s6166_s12 = inlined_call_operand.vmem [shape: f32[2,1,32], index: 12, kind: input, shape index: {}]   ;;  %s6167_s13 = inlined_call_operand.vmem [shape: f32[2,1,32], index: 13, kind: input, shape index: {}]   ;;  %s6168_s14 = inlined_call_operand.vmem [shape: f32[2,32,64], index: 14, kind: input, shape index: {}]   ;;  %s6169_s15 = inlined_call_operand.vmem [shape: f32[2,1,64], index: 15, kind: input, shape index: {}]   ;;  %s6170_s16 = inlined_call_operand.vmem [shape: f32[2,64,32], index: 16, kind: input, shape index: {}]   ;;  %s6171_s17 = inlined_call_operand.vmem [shape: f32[2,1,32], index: 17, kind: input, shape index: {}]   ;;  %s6172_s18 = inlined_call_operand.vmem [shape: f32[2,1,32], index: 18, kind: input, shape index: {}]   ;;  %s6173_s19 = inlined_call_operand.vmem [shape: f32[2,1,32], index: 19, kind: input, shape index: {}]   ;;  %s6174_s20 = inlined_call_operand.vmem [shape: f32[32,128], index: 20, kind: input, shape index: {}]   ;;  %s6175_s21 = inlined_call_operand.vmem [shape: f32[1,128], index: 21, kind: input, shape index: {}]   ;;  %s6176_s22 = inlined_call_operand.vmem [shape: f32[5,128,128], index: 22, kind: input, shape index: {}]   ;;  %s6177_s23 = inlined_call_operand.vmem [shape: f32[5,1,128], index: 23, kind: input, shape index: {}]   ;;  %s6178_s24 = inlined_call_operand.hbm [shape: f32[2,1,128], index: 24, kind: output, shape index: {}]  }
   0x1   :  { %6198 = sst [smem:[#allocation14_spill]] %s6154_s0 }
   0x2   :  { %6199 = sst [smem:[#allocation15_spill]] %s6155_s1 }
   0x3   :  { %6200 = sst [smem:[#allocation16_spill]] %s6156_s2 }
   0x4   :  { %6201 = sst [smem:[#allocation17_spill]] %s6157_s3 }
   0x5   :  { %6202 = sst [smem:[#allocation18_spill]] %s6158_s4 }
   0x6   :  { %6203 = sst [smem:[#allocation19_spill]] %s6159_s5 }
   0x7   :  { %6204 = sst [smem:[#allocation20_spill]] %s6160_s6 }
   0x8   :  { %6205 = sst [smem:[#allocation21_spill]] %s6161_s7 }
   0x9   :  { %6206 = sst [smem:[#allocation22_spill]] %s6162_s8 }
   0xa   :  { %6207 = sst [smem:[#allocation23_spill]] %s6178_s24 }
   0xb   :  { %29 = vsyncpa [#allocation3], 0 }
   0xc   :  { %31 = vsyncpa [#allocation3 + $0x1], 0  ;;  %s5217_s5 = smov 0   ;;  %s5219_s26 = smov 0  }
   0xd   :  { %s5221_s27 = smov 0   ;;  %s5223_s28 = smov 0  }
   0xe LB: > { %6208 = sst [smem:[#allocation5_spill]] %s5074_s5  ;;  %s5238_s6 = sadd.s32 4294967295, %s5086_s28   ;;  %s5086_s28 = sphi %s5223_s28, %s6235_s28   ;;  %s5082_s27 = sphi %s5221_s27, %s6238_s27   ;;  %s5078_s26 = sphi %s5219_s26, %s6237_s26   ;;  %s5074_s5 = sphi %s5217_s5, %s6236_s5  }
   0xf   : > { %6209 = sst [smem:[#allocation6_spill]] %s5078_s26  ;;  %s3846_s2 = sadd.s32 4294967294, %s5086_s28  }
  0x10   : > { %6210 = sst [smem:[#allocation7_spill]] %s5082_s27  ;;  %s5242_s29 = sadd.s32 1, %s5086_s28  }
  0x11   : > { %6211 = sst [smem:[#allocation8_spill]] %s5086_s28  ;;  %s558_s0 = sadd.s32 1, %s5082_s27 }
  0x12   : > { %6212 = sst [smem:[#allocation9_spill]] %s5238_s6  ;;  %s555_s7 = ssub.s32 %s5086_s28, %s5242_s29 }
  0x13   : > { %6213 = sst [smem:[#allocation10_spill]] %s5242_s29  ;;  %p568_p0 = scmp.ne.s32.totalorder %s5082_s27, %s5078_s26 }
  0x14   : > { %p556_p1 = scmp.eq.s32.totalorder %s555_s7, 0  ;;  %p569_p2 = scmp.eq.s32.totalorder %s5238_s6, 1 }
  0x15   : > { %p574_p3 = scmp.ne.s32.totalorder %s5078_s26, %s5074_s5  ;;  %p575_p4 = scmp.eq.s32.totalorder %s3846_s2, 1 }
  0x16   : > { %s5253_s30 = scalar_select %p556_p1, %s5082_s27, %s558_s0  }
  0x17   : > { %p5255_p5 = por %p569_p2, %p568_p0  ;;  %p5259_p6 = por %p575_p4, %p574_p3 }
  0x18   : > { %6214 = sst [smem:[#allocation11_spill]] %s5253_s30  ;;  %p3849_p7 = scmp.ge.s32.totalorder %s5086_s28, 1 }
  0x19   : > { %s6215_s3 = scalar_select %p5255_p5, 1, 0 }
  0x1a   : > { %s6217_s25 = scalar_select %p5259_p6, 1, 0 }
  0x1b   : > { %6216 = sst [smem:[#allocation12_spill]] %s6215_s3  ;;  %p672_p8 = scmp.lt.s32.totalorder %s5086_s28, 3 }
  0x1c   : > { %6218 = sst [smem:[#allocation13_spill]] %s6217_s25 }
  0x1d   : > { %p673_p9 = pnand %p3849_p7, %p672_p8 }
  0x1e   : > { %p739_p10 = scmp.lt.s32.totalorder (!%p673_p9), %s5238_s6, 1  ;;  %vm749_vm0 = vcmask (!%p673_p9), 261120   ;;  %s6219_s0 = sld [smem:[#allocation14_spill]] (!%p673_p9)  ;;  %v5088_v12 = vmov (!%p673_p9), 0.0|0.0   ;;  %vm5089_vm1 = vmmov (!%p673_p9), 0   ;;  %v5090_v20 = vmov (!%p673_p9), 0.0  }
  0x1f   : > { %676 = sbr.rel (%p673_p9) target bundleno = 7706 (0x1e1a), region = 116  ;;  %s6220_s29 = sld [smem:[#allocation18_spill]] (!%p673_p9)  ;;  %4706 = vmatprep.subr.bf16.mxu1 (!%p673_p9), %v5088_v12  ;;  %4724 = vmatprep.subr.bf16.mxu0 (!%p673_p9), %v5088_v12  ;;  %vm1025_vm2 = vcmask (!%p673_p9), 130048   ;;  %v3857_v60 = vld [vmem:[%s6163_s9] ss:$0 sm:$0xff] (!%p673_p9)  ;;  %vm1110_vm3 = vcmask (!%p673_p9), 64512  }
  0x20   : > { %4268 = vmatprep.mubr.msk.f32.mxu1 (!%p673_p9), %vm5089_vm1, %v5090_v20  ;;  %4311 = vmatprep.mubr.msk.f32.mxu0 (!%p673_p9), %vm5089_vm1, %v5090_v20  ;;  %s6221_s27 = sld [smem:[#allocation16_spill]] (!%p673_p9)  ;;  %s6223_s24 = sld [smem:[#allocation22_spill]] (!%p673_p9)  ;;  %vm1903_vm4 = vcmask (!%p673_p9), 523264  }
  0x21   : > { %s6224_s5 = sld [smem:[#allocation17_spill]] (!%p673_p9)  ;;  %s6225_s3 = sld [smem:[#allocation21_spill]] (!%p673_p9) }
  0x22   : > { %s6226_s2 = sld [smem:[#allocation19_spill]] (!%p673_p9)  ;;  %s6227_s25 = sld [smem:[#allocation15_spill]] (!%p673_p9) }
  0x23   : > { %s6228_s30 = sld [smem:[#allocation6_spill]] (!%p673_p9)  ;;  %s6231_s1 = sld [smem:[#allocation23_spill]] (!%p673_p9) }
  0x25   : > { %v779_v7 = vld [vmem:[%s6220_s29] sm:$0xff] (!%p673_p9)  ;;  %v780_v8 = vld [vmem:[%s6220_s29 + $0x8] sm:$0xff] (!%p673_p9)  ;;  %v781_v14 = vld [vmem:[%s6220_s29 + $0x10] sm:$0xff] (!%p673_p9) }
  0x26   : > { %s5267_s8 = scalar_select %p739_p10, %s5238_s6, 1  ;;  %v3863_v9 = vld [vmem:[%s6220_s29 + $0x20] sm:$0xff]  ;;  %v4707_v10 = vpack.c.bf16 %v780_v8, %v779_v7  ;;  %v3864_v11 = vld [vmem:[%s6220_s29 + $0x28] sm:$0xff]  ;;  %v782_v15 = vld [vmem:[%s6220_s29 + $0x18] sm:$0xff] }
  0x27   : > { %v4725_v13 = vpack.c.bf16 %v3864_v11, %v3863_v9  ;;  %v3865_v16 = vld [vmem:[%s6220_s29 + $0x30] sm:$0xff]  ;;  %v4710_v17 = vpack.c.bf16 %v782_v15, %v781_v14  ;;  %v3866_v18 = vld [vmem:[%s6220_s29 + $0x38] sm:$0xff]  ;;  %v3851_v25 = vld [vmem:[%s6221_s27] ss:$0 sm:$0xff] }
  0x28   : > { %s3850_s4 = sshll.u32 %s5267_s8, 3  ;;  %4708 = vmatpush3.bf16.msra.mxu1 %v4707_v10  ;;  %v4728_v19 = vpack.c.bf16 %v3866_v18, %v3865_v16  ;;  %v3877_v29 = vld [vmem:[%s6223_s24 + $0x20] sm:$0xff]  ;;  %v3878_v30 = vld [vmem:[%s6223_s24 + $0x28] sm:$0xff]  ;;  %v3879_v38 = vld [vmem:[%s6223_s24 + $0x30] sm:$0xff]  ;;  %s745_s28 = scalar_lea.vmem %s6227_s25, %s5267_s8 }
  0x29   : > { %s742_s7 = scalar_lea.vmem %s6219_s0, %s3850_s4  ;;  %4726 = vmatpush3.bf16.msra.mxu0 %v4725_v13  ;;  %4709 = vmatprep.subr.bf16.mxu1 %v5088_v12  ;;  %v3852_v31 = vld [vmem:[%s6224_s5] ss:$0 sm:$0xff]  ;;  %v4737_v34 = vpack.c.bf16 %v3878_v30, %v3877_v29  ;;  %v3880_v39 = vld [vmem:[%s6223_s24 + $0x38] sm:$0xff]  ;;  %v945_v43 = vld [vmem:[%s6223_s24 + $0x8] sm:$0xff]  ;;  %s6229_s25 = sld [smem:[#allocation9_spill]] }
  0x2a   : > { %v746_v0 = vld [vmem:[%s742_s7] sm:$0xff]  ;;  %4727 = vmatprep.subr.bf16.mxu0 %v5088_v12  ;;  %s6222_s7 = sld [smem:[#allocation20_spill]]  ;;  %v4740_v41 = vpack.c.bf16 %v3880_v39, %v3879_v38  ;;  %v946_v45 = vld [vmem:[%s6223_s24 + $0x10] sm:$0xff]  ;;  %v947_v46 = vld [vmem:[%s6223_s24 + $0x18] sm:$0xff]  ;;  %s737_s5 = sand.u32 1, %s6228_s30  }
  0x2b   : > { %v750_v1 = vsel %vm749_vm0, %v746_v0, 0.0  ;;  %v944_v42 = vld [vmem:[%s6223_s24] sm:$0xff]  ;;  %v4722_v47 = vpack.c.bf16 %v947_v46, %v946_v45  ;;  %s738_s4 = scalar_lea.vmem [#allocation2], %s737_s5  ;;  %s3770_s30 = scalar_lea.sflag [#allocation3], %s737_s5 }
  0x2c   : > { %751 = vadd.xlane.f32.xlu0 %v750_v1  ;;  %4711 = vmatpush3.bf16.msra.mxu1 %v4710_v17  ;;  %v4719_v44 = vpack.c.bf16 %v945_v43, %v944_v42  ;;  %v3855_v52 = vld [vmem:[%s6225_s3] ss:$0 sm:$0xff]  ;;  %v3882_v29 = vld [vmem:[%s6163_s9 + $0x1] ss:$0 sm:$0xff]  ;;  %v3887_v43 = vld [vmem:[%s6164_s10 + $0x10] sm:$0xff]  ;;  %s3782_s6 = sshll.u32 %s738_s4, 4  ;;  %s6114_s6 = int_to_ptr.vmem [resolvable:$true] %s3782_s6 }
  0x2d   : > { %4729 = vmatpush3.bf16.msra.mxu0 %v4728_v19  ;;  %4712 = vmatprep.subr.bf16.mxu1 %v5088_v12  ;;  %v3853_v55 = vld [vmem:[%s6226_s2] ss:$0 sm:$0xff]  ;;  %s5024_s27 = scalar_lea.vmem %s6114_s6, 16 }
  0x2e   : > { %4736 = vmatprep.subr.bf16.mxu0 %v5088_v12  ;;  %p5025_p11 = scmp.ne.s32.totalorder %s6114_s6, %s5024_s27 }
  0x2f   : > { %s4051_s8 = sshll.u32 %s6229_s25, 4  ;;  %s5091_s25 = smov [#allocation2]  }
  0x30   : > { %v863_v26 = vld [vmem:[%s6222_s7] sm:$0xff]  ;;  %v864_v28 = vld [vmem:[%s6222_s7 + $0x8] sm:$0xff]  ;;  %v865_v35 = vld [vmem:[%s6222_s7 + $0x10] sm:$0xff]  ;;  %p5026_p12 = pnand %p5025_p11, %p5255_p5 }
  0x31   : > { %v4713_v33 = vpack.c.bf16 %v864_v28, %v863_v26  ;;  %v866_v37 = vld [vmem:[%s6222_s7 + $0x18] sm:$0xff]  ;;  %v3870_v13 = vld [vmem:[%s6222_s7 + $0x20] sm:$0xff]  ;;  %v3871_v14 = vld [vmem:[%s6222_s7 + $0x28] sm:$0xff] }
  0x32   : > { %v4716_v40 = vpack.c.bf16 %v866_v37, %v865_v35  ;;  %v4731_v16 = vpack.c.bf16 %v3871_v14, %v3870_v13  ;;  %v3872_v18 = vld [vmem:[%s6222_s7 + $0x30] sm:$0xff]  ;;  %v3873_v19 = vld [vmem:[%s6222_s7 + $0x38] sm:$0xff]  ;;  %v3868_v26 = vld [vmem:[%s6226_s2 + $0x1] ss:$0 sm:$0xff]  ;;  %p5027_p13 = pneg %p5026_p12 }
  0xb9   : > { %v752_v2 = vpop.xlane.xlu0 %751 }
  0xba   : > { %v754_v3 = vmul.f32 0.03125, %v752_v2 }
  0xbc   : > { %v755_v4 = vsub.f32 %v746_v0, %v754_v3  ;;  %v5400_v0 = vld [vmem:[%s745_s28] ss:$0 sm:$0xff]  ;;  %s5028_s28 = sshll.u32 %s5091_s25, 4  ;;  %s5029_s28 = int_to_ptr.vmem [resolvable:$false] %s5028_s28 }
  0xbd   : > { %p5031_p0 = scmp.lt.s32.totalorder %s6114_s6, %s5029_s28 }
  0xbe   : > { %v756_v5 = vmul.f32 %v755_v4, %v755_v4 }
  0xc0   : > { %v757_v6 = vsel %vm749_vm0, %v756_v5, 0.0 }
  0xc1   : > { %758 = vadd.xlane.f32.xlu0 %v757_v6 }
 0x14e   : > { %v759_v21 = vpop.xlane.xlu0 %758 }
 0x14f   : > { %v760_v22 = vmul.f32 0.03125, %v759_v21  ;;  %v4734_v21 = vpack.c.bf16 %v3873_v19, %v3872_v18 }
 0x151   : > { %v761_v23 = vadd.f32 1e-12, %v760_v22 }
 0x153   : > { %4994 = vrsqrt.f32 %v761_v23 }
 0x15d   : > { %v4995_v24 = vpop.eup %4994 }
 0x15e   : > { %v763_v27 = vmul.f32 %v4995_v24, %v755_v4  ;;  %v3875_v24 = vld [vmem:[%s6225_s3 + $0x1] ss:$0 sm:$0xff] }
 0x160   : > { %v770_v32 = vmul.f32 %v3851_v25, %v763_v27 }
 0x162   : > { %v5330_v36 = vadd.f32 %v3852_v31, %v770_v32 }
 0x164   : > { %4269 = vmatmul.mubr.msk.f32.vlgmr.msra.gmra.mrb[0].mxu1 %vm749_vm0, %v5330_v36  ;;  %4312 = vmatmul.mubr.msk.f32.vlgmr.msra.gmra.mrb[0].mxu0 %vm749_vm0, %v5330_v36 }
 0x165   : > { %4714 = vmatpush3.bf16.msra.mxu1 %v4713_v33  ;;  %4738 = vmatpush3.bf16.msra.mxu0 %v4737_v34 }
 0x166   : > { %4715 = vmatprep.subr.bf16.mxu1 %v5088_v12  ;;  %4739 = vmatprep.subr.bf16.mxu0 %v5088_v12 }
 0x167   : > { %4279 = vmatprep.mubr.msk.f32.mxu1 %vm5089_vm1, %v5090_v20  ;;  %4333 = vmatprep.mubr.msk.f32.mxu0 %vm5089_vm1, %v5090_v20 }
 0x169   : > { %4717 = vmatpush3.bf16.msra.mxu1 %v4716_v40  ;;  %4741 = vmatpush3.bf16.msra.mxu0 %v4740_v41 }
 0x16a   : > { %4718 = vmatprep.subr.bf16.mxu1 %v5088_v12  ;;  %4742 = vmatprep.subr.bf16.mxu0 %v5088_v12 }
 0x16c   : > { %4280 = vmatmul.mubr.msk.f32.vlgmr.msra.gmra.mrb[2].mxu1 %vm749_vm0, %v5330_v36  ;;  %4334 = vmatmul.mubr.msk.f32.vlgmr.msra.gmra.mrb[2].mxu0 %vm749_vm0, %v5330_v36 }
 0x16d   : > { %4720 = vmatpush3.bf16.msra.mxu1 %v4719_v44  ;;  %4290 = vmatprep.mubr.msk.f32.mxu1 %vm5089_vm1, %v5090_v20  ;;  %v3888_v44 = vld [vmem:[%s6164_s10 + $0x18] sm:$0xff] }
 0x16e   : > { %4721 = vmatprep.subr.bf16.mxu1 %v5088_v12  ;;  %4350 = vmatprep.mubr.msk.f32.mxu0 %vm5089_vm1, %v5090_v20  ;;  %v4743_v45 = vpack.c.bf16 %v3888_v44, %v3887_v43 }
 0x170   : > { %4744 = vmatpush3.bf16.msra.mxu0 %v4743_v45 }
 0x171   : > { %4723 = vmatpush3.bf16.msra.mxu1 %v4722_v47  ;;  %4748 = vmatprep.subr.bf16.mxu0 %v5088_v12  ;;  %v1195_v47 = vld [vmem:[%s6164_s10] sm:$0xff] }
 0x172   : > { %4293 = vmatprep.subr.mxu1 %v5090_v20 }
 0x174   : > { %4291 = vmatmul.mubr.msk.f32.vlgmr.msra.gmra.mrb[4].mxu1 %vm749_vm0, %v5330_v36 }
 0x175   : > { %4295 = vmatprep.mubr.msk.f32.mxu1 %vm5089_vm1, %v5090_v20 }
 0x237   : > { %v859_v48 = vpop.f32.mrb[0].mxu1  ;;  %v5379_v49 = vpop.f32.mrb[0].mxu0 }
 0x238   : > { %v4270_v50 = vpop.f32.mrb[1].mxu1  ;;  %v4313_v51 = vpop.f32.mrb[1].mxu0  ;;  %v860_v59 = vadd.f32 %v3853_v55, %v859_v48  ;;  %v1277_v30 = vadd.f32 %v3868_v26, %v5379_v49  ;;  %v1196_v48 = vld [vmem:[%s6164_s10 + $0x8] sm:$0xff] }
 0x239   : > { %v4746_v50 = vpack.c.bf16 %v1196_v48, %v1195_v47  ;;  %v3896_v47 = vld [vmem:[%s6171_s17] ss:$0 sm:$0xff] }
 0x23f   : > { %v940_v53 = vpop.f32.mrb[2].mxu1  ;;  %v1442_v54 = vpop.f32.mrb[2].mxu0 }
 0x240   : > { %v941_v56 = vadd.f32 %v3855_v52, %v940_v53  ;;  %v4281_v57 = vpop.f32.mrb[3].mxu1  ;;  %v4335_v58 = vpop.f32.mrb[3].mxu0  ;;  %v1443_v31 = vadd.f32 %v3882_v29, %v1442_v54 }
 0x242   : > { %4294 = vmatpush3.xpose.msk.msra.mxu1 %vm1025_vm2, %v941_v56 }
 0x243   : > { %4298 = vmatprep.subr.mxu1 %v5090_v20 }
 0x245   : > { %4296 = vmatmul.mubr.msk.f32.vlgmr.msra.gmra.mrb[6].mxu1 %vm1025_vm2, %v860_v59  ;;  %v3891_v59 = vld [vmem:[%s6165_s11] ss:$0 sm:$0xff] }
 0x246   : > { %4300 = vmatprep.mubr.msk.f32.mxu1 %vm5089_vm1, %v5090_v20 }
 0x247   : > { %v1021_v61 = vpop.f32.mrb[4].mxu1 }
 0x248   : > { %v1022_v62 = vadd.f32 %v3857_v60, %v1021_v61  ;;  %v4292_v63 = vpop.f32.mrb[5].mxu1 }
 0x24a   : > { %4299 = vmatpush3.msra.mxu1 %v1022_v62 }
 0x24b   : > { %4730 = vmatprep.subr.bf16.mxu1 %v5088_v12 }
 0x318   : > { %v1098_v1 = vpop.f32.mrb[6].mxu1 }
 0x319   : > { %v1102_v2 = vmul.f32 0.25, %v1098_v1  ;;  %v4297_v3 = vpop.f32.mrb[7].mxu1 }
 0x31b   : > { %v1109_v4 = vadd.f32 %v5400_v0, %v1102_v2 }
 0x31d   : > { %v1111_v5 = vsel %vm1110_vm3, %v1109_v4, -inf }
 0x31e   : > { %1112 = vmax.xlane.f32.xlu1 %v1111_v5  ;;  %v1795_v5 = vld [vmem:[%s6168_s14] sm:$0xff] }
 0x3ab   : > { %v1113_v6 = vpop.xlane.xlu1 %1112 }
 0x3ac   : > { %v1114_v7 = vsub.f32 %v1109_v4, %v1113_v6  ;;  %v1796_v6 = vld [vmem:[%s6168_s14 + $0x8] sm:$0xff] }
 0x3ae   : > { %v1115_v8 = vmul.f32 1.442695, %v1114_v7  ;;  %v1797_v7 = vld [vmem:[%s6168_s14 + $0x10] sm:$0xff] }
 0x3b0   : > { %4996 = vpow2.f32 %v1115_v8  ;;  %v1798_v8 = vld [vmem:[%s6168_s14 + $0x18] sm:$0xff] }
 0x3ba   : > { %v4997_v9 = vpop.eup %4996 }
 0x3bb   : > { %v1117_v10 = vsel %vm1110_vm3, %v4997_v9, 0.0 }
 0x3bc   : > { %1118 = vadd.xlane.f32.xlu1 %v1117_v10 }
 0x449   : > { %v1119_v11 = vpop.xlane.xlu1 %1118 }
 0x44a   : > { %4998 = vrcp.f32 %v1119_v11 }
 0x454   : > { %v4999_v15 = vpop.eup %4998 }
 0x455   : > { %v1121_v17 = vmul.f32 %v4999_v15, %v4997_v9  ;;  %v4752_v9 = vpack.c.bf16 %v1798_v8, %v1797_v7  ;;  %v3892_v15 = vld [vmem:[%s6166_s12] ss:$0 sm:$0xff] }
 0x457   : > { %4301 = vmatmul.mubr.msk.f32.vlgmr.msra.gmra.mrb[8].mxu1 %vm1110_vm3, %v1121_v17  ;;  %v3893_v17 = vld [vmem:[%s6167_s13] ss:$0 sm:$0xff] }
 0x458   : > { %4732 = vmatpush3.bf16.msra.mxu1 %v4731_v16  ;;  %4322 = vmatprep.mubr.msk.f32.mxu1 %vm5089_vm1, %v5090_v20 }
 0x459   : > { %4733 = vmatprep.subr.bf16.mxu1 %v5088_v12 }
 0x45c   : > { %4735 = vmatpush3.bf16.msra.mxu1 %v4734_v21  ;;  %v1888_v21 = vld [vmem:[%s6170_s16] sm:$0xff] }
 0x45d   : > { %4336 = vmatprep.subr.mxu1 %v5090_v20 }
 0x45f   : > { %4323 = vmatmul.mubr.msk.f32.vlgmr.msra.gmra.mrb[10].mxu1 %vm749_vm0, %v5330_v36 }
 0x460   : > { %4338 = vmatprep.mubr.msk.f32.mxu1 %vm5089_vm1, %v5090_v20 }
 0x52a   : > { %v1191_v22 = vpop.f32.mrb[8].mxu1 }
 0x52b   : > { %v4302_v23 = vpop.f32.mrb[9].mxu1 }
 0x532   : > { %v1359_v25 = vpop.f32.mrb[10].mxu1 }
 0x533   : > { %v1360_v27 = vadd.f32 %v3875_v24, %v1359_v25  ;;  %v4324_v28 = vpop.f32.mrb[11].mxu1  ;;  %v1890_v24 = vld [vmem:[%s6170_s16 + $0x10] sm:$0xff]  ;;  %v1891_v25 = vld [vmem:[%s6170_s16 + $0x18] sm:$0xff] }
 0x534   : > { %v4758_v26 = vpack.c.bf16 %v1891_v25, %v1890_v24  ;;  %v1893_v28 = vld [vmem:[%s6170_s16 + $0x28] sm:$0xff] }
 0x535   : > { %4337 = vmatpush3.xpose.msk.msra.mxu1 %vm1025_vm2, %v1360_v27  ;;  %v1892_v27 = vld [vmem:[%s6170_s16 + $0x20] sm:$0xff] }
 0x536   : > { %4341 = vmatprep.subr.mxu1 %v5090_v20  ;;  %v4761_v29 = vpack.c.bf16 %v1893_v28, %v1892_v27 }
 0x538   : > { %4339 = vmatmul.mubr.msk.f32.vlgmr.msra.gmra.mrb[12].mxu1 %vm1025_vm2, %v1277_v30  ;;  %v1894_v30 = vld [vmem:[%s6170_s16 + $0x30] sm:$0xff] }
 0x539   : > { %4342 = vmatpush3.msra.mxu1 %v1443_v31  ;;  %4343 = vmatprep.mubr.msk.f32.mxu1 %vm5089_vm1, %v5090_v20  ;;  %v1895_v31 = vld [vmem:[%s6170_s16 + $0x38] sm:$0xff] }
 0x53a   : > { %4745 = vmatprep.subr.bf16.mxu1 %v5088_v12 }
 0x60b   : > { %v1518_v32 = vpop.f32.mrb[12].mxu1 }
 0x60c   : > { %v1522_v33 = vmul.f32 0.25, %v1518_v32  ;;  %v4340_v34 = vpop.f32.mrb[13].mxu1  ;;  %v4764_v32 = vpack.c.bf16 %v1895_v31, %v1894_v30  ;;  %v3926_v31 = vld [vmem:[%s6220_s29 + $0x60] sm:$0xff] }
 0x60e   : > { %v1523_v35 = vadd.f32 %v5400_v0, %v1522_v33  ;;  %v3894_v33 = vld [vmem:[%s6169_s15] ss:$0 sm:$0xff] }
 0x610   : > { %v1524_v37 = vsel %vm1110_vm3, %v1523_v35, -inf }
 0x611   : > { %1525 = vmax.xlane.f32.xlu0 %v1524_v37 }
 0x69e   : > { %v1526_v38 = vpop.xlane.xlu0 %1525 }
 0x69f   : > { %v1527_v39 = vsub.f32 %v1523_v35, %v1526_v38 }
 0x6a1   : > { %v1528_v40 = vmul.f32 1.442695, %v1527_v39 }
 0x6a3   : > { %5000 = vpow2.f32 %v1528_v40 }
 0x6ad   : > { %v5001_v41 = vpop.eup %5000 }
 0x6ae   : > { %v1530_v42 = vsel %vm1110_vm3, %v5001_v41, 0.0 }
 0x6af   : > { %1531 = vadd.xlane.f32.xlu1 %v1530_v42 }
 0x73c   : > { %v1532_v46 = vpop.xlane.xlu1 %1531 }
 0x73d   : > { %5002 = vrcp.f32 %v1532_v46 }
 0x747   : > { %v5003_v49 = vpop.eup %5002 }
 0x748   : > { %v1534_v51 = vmul.f32 %v5003_v49, %v5001_v41 }
 0x74a   : > { %4344 = vmatmul.mubr.msk.f32.vlgmr.msra.gmra.mrb[14].mxu1 %vm1110_vm3, %v1534_v51 }
 0x74b   : > { %4747 = vmatpush3.bf16.msra.mxu1 %v4746_v50  ;;  %4357 = vmatprep.mubr.msk.f32.mxu1 %vm5089_vm1, %v5090_v20 }
 0x74c   : > { %4754 = vmatprep.subr.bf16.mxu1 %v5088_v12 }
 0x74e   : > { %4358 = vmatmul.mubr.msk.f32.vlgmr.msra.gmra.mrb[16].mxu1 %vm1025_vm2, %v1191_v22  ;;  %v1889_v22 = vld [vmem:[%s6170_s16 + $0x8] sm:$0xff] }
 0x74f   : > { %4387 = vmatprep.mubr.msk.f32.mxu1 %vm5089_vm1, %v5090_v20  ;;  %v4755_v23 = vpack.c.bf16 %v1889_v22, %v1888_v21  ;;  %v3910_v21 = vld [vmem:[%s6222_s7 + $0x58] sm:$0xff] }
 0x751   : > { %4756 = vmatpush3.bf16.msra.mxu1 %v4755_v23  ;;  %v3919_v23 = vld [vmem:[%s6163_s9 + $0x2] ss:$0 sm:$0xff] }
 0x752   : > { %4757 = vmatprep.subr.bf16.mxu1 %v5088_v12 }
 0x755   : > { %4759 = vmatpush3.bf16.msra.mxu1 %v4758_v26 }
 0x756   : > { %4760 = vmatprep.subr.bf16.mxu1 %v5088_v12 }
 0x759   : > { %4762 = vmatpush3.bf16.msra.mxu1 %v4761_v29  ;;  %v3912_v29 = vld [vmem:[%s6225_s3 + $0x2] ss:$0 sm:$0xff] }
 0x75a   : > { %4763 = vmatprep.subr.bf16.mxu1 %v5088_v12 }
 0x75d   : > { %4765 = vmatpush3.bf16.msra.mxu1 %v4764_v32  ;;  %v3927_v32 = vld [vmem:[%s6220_s29 + $0x68] sm:$0xff] }
 0x75e   : > { %4778 = vmatprep.subr.bf16.mxu1 %v5088_v12 }
 0x81d   : > { %v1604_v52 = vpop.f32.mrb[14].mxu1 }
 0x81e   : > { %v4345_v53 = vpop.f32.mrb[15].mxu1  ;;  %4351 = vmatmul.mubr.msk.f32.vlgmr.msra.gmra.mrb[4].mxu0 %vm1025_vm2, %v1604_v52 }
 0x81f   : > { %4368 = vmatprep.mubr.msk.f32.mxu0 %vm5089_vm1, %v5090_v20 }
 0x821   : > { %v1753_v54 = vpop.f32.mrb[16].mxu1 }
 0x822   : > { %v4359_v55 = vpop.f32.mrb[17].mxu1 }
 0x8f1   : > { %v1680_v56 = vpop.f32.mrb[4].mxu0 }
 0x8f2   : > { %v1754_v57 = vadd.f32 %v1753_v54, %v1680_v56  ;;  %v4352_v58 = vpop.f32.mrb[5].mxu0 }
 0x8f3   : > { %v3900_v58 = vld [vmem:[%s6220_s29 + $0x40] sm:$0xff] }
 0x8f4   : > { %v1757_v60 = vadd.f32 %v1754_v57, %v5330_v36  ;;  %v4749_v36 = vpack.c.bf16 %v1796_v6, %v1795_v5  ;;  %v3917_v5 = vld [vmem:[%s6223_s24 + $0x58] sm:$0xff] }
 0x8f6   : > { %v1765_v61 = vadd.f32 %v3891_v59, %v1757_v60  ;;  %4750 = vmatpush3.bf16.msra.mxu0 %v4749_v36  ;;  %v3901_v59 = vld [vmem:[%s6220_s29 + $0x48] sm:$0xff] }
 0x8f7   : > { %4751 = vmatprep.subr.bf16.mxu0 %v5088_v12  ;;  %v4767_v60 = vpack.c.bf16 %v3901_v59, %v3900_v58 }
 0x8f8   : > { %v1768_v62 = vsel %vm749_vm0, %v1765_v61, 0.0 }
 0x8f9   : > { %1769 = vadd.xlane.f32.xlu0 %v1768_v62  ;;  %v3915_v62 = vld [vmem:[%s6223_s24 + $0x48] sm:$0xff] }
 0x8fa   : > { %4753 = vmatpush3.bf16.msra.mxu0 %v4752_v9 }
 0x8fb   : > { %4766 = vmatprep.subr.bf16.mxu0 %v5088_v12 }
 0x986   : > { %v1770_v63 = vpop.xlane.xlu0 %1769 }
 0x987   : > { %v1771_v1 = vmul.f32 0.03125, %v1770_v63 }
 0x989   : > { %v1772_v2 = vsub.f32 %v1765_v61, %v1771_v1  ;;  %v3914_v61 = vld [vmem:[%s6223_s24 + $0x40] sm:$0xff]  ;;  %v3902_v1 = vld [vmem:[%s6220_s29 + $0x50] sm:$0xff] }
 0x98a   : > { %v4779_v63 = vpack.c.bf16 %v3915_v62, %v3914_v61 }
 0x98b   : > { %v1773_v3 = vmul.f32 %v1772_v2, %v1772_v2 }
 0x98d   : > { %v1774_v4 = vsel %vm749_vm0, %v1773_v3, 0.0 }
 0x98e   : > { %1775 = vadd.xlane.f32.xlu1 %v1774_v4  ;;  %v3916_v4 = vld [vmem:[%s6223_s24 + $0x50] sm:$0xff] }
 0x98f   : > { %v4782_v6 = vpack.c.bf16 %v3917_v5, %v3916_v4  ;;  %v3935_v5 = vld [vmem:[%s6222_s7 + $0x70] sm:$0xff] }
 0xa1b   : > { %v1776_v10 = vpop.xlane.xlu1 %1775 }
 0xa1c   : > { %v1777_v11 = vmul.f32 0.03125, %v1776_v10  ;;  %v3898_v10 = vld [vmem:[%s6172_s18] ss:$0 sm:$0xff] }
 0xa1e   : > { %v1778_v13 = vadd.f32 1e-12, %v1777_v11 }
 0xa20   : > { %5004 = vrsqrt.f32 %v1778_v13  ;;  %v3907_v13 = vld [vmem:[%s6222_s7 + $0x40] sm:$0xff] }
 0xa2a   : > { %v5005_v14 = vpop.eup %5004 }
 0xa2b   : > { %v1780_v16 = vmul.f32 %v5005_v14, %v1772_v2  ;;  %v3903_v2 = vld [vmem:[%s6220_s29 + $0x58] sm:$0xff]  ;;  %v3908_v14 = vld [vmem:[%s6222_s7 + $0x48] sm:$0xff] }
 0xa2c   : > { %v4770_v3 = vpack.c.bf16 %v3903_v2, %v3902_v1  ;;  %v3934_v1 = vld [vmem:[%s6222_s7 + $0x68] sm:$0xff] }
 0xa2d   : > { %v1787_v18 = vmul.f32 %v3892_v15, %v1780_v16  ;;  %v3899_v15 = vld [vmem:[%s6173_s19] ss:$0 sm:$0xff] }
 0xa2f   : > { %v1794_v19 = vadd.f32 %v3893_v17, %v1787_v18  ;;  %v4773_v17 = vpack.c.bf16 %v3908_v14, %v3907_v13 }
 0xa31   : > { %4369 = vmatmul.mubr.msk.f32.vlgmr.msra.gmra.mrb[6].mxu0 %vm749_vm0, %v1794_v19 }
 0xa32   : > { %4398 = vmatprep.mubr.msk.f32.mxu0 %vm5089_vm1, %v5090_v20  ;;  %4768 = vmatpush3.bf16.msra.mxu0 %v4767_v60 }
 0xa33   : > { %4769 = vmatprep.subr.bf16.mxu0 %v5088_v12 }
 0xa36   : > { %4771 = vmatpush3.bf16.msra.mxu0 %v4770_v3 }
 0xa37   : > { %4772 = vmatprep.subr.bf16.mxu0 %v5088_v12 }
 0xb04   : > { %v1875_v34 = vpop.f32.mrb[6].mxu0 }
 0xb05   : > { %v1876_v35 = vadd.f32 %v3894_v33, %v1875_v34  ;;  %v4370_v37 = vpop.f32.mrb[7].mxu0  ;;  %v3905_v33 = vld [vmem:[%s6226_s2 + $0x2] ss:$0 sm:$0xff] }
 0xb06   : > { %v4785_v37 = vpack.c.bf16 %v3927_v32, %v3926_v31  ;;  %v3951_v31 = vld [vmem:[%s6164_s10 + $0x38] sm:$0xff] }
 0xb07   : > { %v1880_v38 = vmul.f32 0.044715, %v1876_v35  ;;  %v1879_v44 = vmul.f32 0.5, %v1876_v35 }
 0xb09   : > { %v1881_v39 = vmul.f32 %v1880_v38, %v1876_v35 }
 0xb0b   : > { %v1882_v40 = vmul.f32 %v1881_v39, %v1876_v35  ;;  %v3928_v39 = vld [vmem:[%s6220_s29 + $0x70] sm:$0xff] }
 0xb0d   : > { %v1883_v41 = vadd.f32 %v1882_v40, %v1876_v35  ;;  %v3929_v40 = vld [vmem:[%s6220_s29 + $0x78] sm:$0xff] }
 0xb0f   : > { %v1884_v42 = vmul.f32 0.7978846, %v1883_v41  ;;  %v4788_v41 = vpack.c.bf16 %v3929_v40, %v3928_v39 }
 0xb11   : > { %5006 = vtanh.f32 %v1884_v42  ;;  %v3940_v42 = vld [vmem:[%s6223_s24 + $0x60] sm:$0xff] }
 0xb1b   : > { %v5007_v43 = vpop.eup %5006 }
 0xb1c   : > { %v1886_v45 = vadd.f32 1.0, %v5007_v43  ;;  %v3941_v43 = vld [vmem:[%s6223_s24 + $0x68] sm:$0xff] }
 0xb1e   : > { %v1887_v46 = vmul.f32 %v1886_v45, %v1879_v44  ;;  %v4797_v44 = vpack.c.bf16 %v3941_v43, %v3940_v42  ;;  %v3942_v45 = vld [vmem:[%s6223_s24 + $0x70] sm:$0xff] }
 0xb20   : > { %4388 = vmatmul.mubr.msk.f32.vlgmr.msra.gmra.mrb[18].mxu1 %vm1903_vm4, %v1887_v46  ;;  %v3943_v46 = vld [vmem:[%s6223_s24 + $0x78] sm:$0xff] }
 0xb21   : > { %4420 = vmatprep.mubr.msk.f32.mxu1 %vm5089_vm1, %v5090_v20  ;;  %4780 = vmatpush3.bf16.msra.mxu1 %v4779_v63  ;;  %v3933_v63 = vld [vmem:[%s6222_s7 + $0x60] sm:$0xff] }
 0xb22   : > { %4781 = vmatprep.subr.bf16.mxu1 %v5088_v12  ;;  %v4791_v3 = vpack.c.bf16 %v3934_v1, %v3933_v63  ;;  %v3958_v1 = vld [vmem:[%s6166_s12 + $0x1] ss:$0 sm:$0xff] }
 0xb25   : > { %4783 = vmatpush3.bf16.msra.mxu1 %v4782_v6  ;;  %v3936_v6 = vld [vmem:[%s6222_s7 + $0x78] sm:$0xff] }
 0xb26   : > { %4428 = vmatprep.subr.mxu1 %v5090_v20 }
 0xbf3   : > { %v1973_v48 = vpop.f32.mrb[18].mxu1 }
 0xbf4   : > { %v1974_v49 = vadd.f32 %v3896_v47, %v1973_v48  ;;  %v4389_v50 = vpop.f32.mrb[19].mxu1  ;;  %v4800_v47 = vpack.c.bf16 %v3943_v46, %v3942_v45  ;;  %v3955_v46 = vld [vmem:[%s6165_s11 + $0x1] ss:$0 sm:$0xff] }
 0xbf6   : > { %v1977_v51 = vadd.f32 %v1974_v49, %v1794_v19  ;;  %v3909_v19 = vld [vmem:[%s6222_s7 + $0x50] sm:$0xff]  ;;  %s5030_s7 = scalar_lea.vmem %s5029_s28, 32 }
 0xbf7   : > { %v4776_v22 = vpack.c.bf16 %v3910_v21, %v3909_v19  ;;  %p5032_p1 = scmp.lt.s32.totalorder %s5030_s7, %s5024_s27 }
 0xbf8   : > { %v1980_v52 = vsel %vm749_vm0, %v1977_v51, 0.0 }
 0xbf9   : > { %1981 = vadd.xlane.f32.xlu0 %v1980_v52  ;;  %p5033_p2 = por %p5032_p1, %p5031_p0 }
 0xbfb   : > { %p5034_p3 = pnand %p5033_p2, %p5027_p13 }
 0xc86   : > { %v1982_v53 = vpop.xlane.xlu0 %1981 }
 0xc87   : > { %v1983_v54 = vmul.f32 0.03125, %v1982_v53 }
 0xc89   : > { %v1984_v55 = vsub.f32 %v1977_v51, %v1983_v54 }
 0xc8b   : > { %v1985_v56 = vmul.f32 %v1984_v55, %v1984_v55 }
 0xc8d   : > { %v1986_v57 = vsel %vm749_vm0, %v1985_v56, 0.0 }
 0xc8e   : > { %1987 = vadd.xlane.f32.xlu1 %v1986_v57 }
 0xd1b   : > { %v1988_v36 = vpop.xlane.xlu1 %1987 }
 0xd1c   : > { %v1989_v7 = vmul.f32 0.03125, %v1988_v36  ;;  %v4794_v36 = vpack.c.bf16 %v3936_v6, %v3935_v5  ;;  %v3967_v6 = vld [vmem:[%s6170_s16 + $0x40] sm:$0xff] }
 0xd1e   : > { %v1990_v8 = vadd.f32 1e-12, %v1989_v7 }
 0xd20   : > { %5008 = vrsqrt.f32 %v1990_v8 }
 0xd2a   : > { %v5009_v9 = vpop.eup %5008 }
 0xd2b   : > { %v1992_v11 = vmul.f32 %v5009_v9, %v1984_v55  ;;  %v3938_v9 = vld [vmem:[%s6225_s3 + $0x3] ss:$0 sm:$0xff]  ;;  %s6112_s3 = scalar_lea.hbm %s6231_s1, %s4051_s8 }
 0xd2d   : > { %v1999_v16 = vmul.f32 %v3898_v10, %v1992_v11  ;;  %v3931_v11 = vld [vmem:[%s6226_s2 + $0x3] ss:$0 sm:$0xff] }
 0xd2f   : > { %v5576_v18 = vadd.f32 %v3899_v15, %v1999_v16  ;;  %v3945_v15 = vld [vmem:[%s6163_s9 + $0x3] ss:$0 sm:$0xff] }
 0xd31   : > { %4399 = vmatmul.mubr.msk.f32.vlgmr.msra.gmra.mrb[8].mxu0 %vm749_vm0, %v5576_v18  ;;  %4421 = vmatmul.mubr.msk.f32.vlgmr.msra.gmra.mrb[20].mxu1 %vm749_vm0, %v5576_v18 }
 0xd32   : > { %4774 = vmatpush3.bf16.msra.mxu0 %v4773_v17  ;;  %4409 = vmatprep.mubr.msk.f32.mxu0 %vm5089_vm1, %v5090_v20 }
 0xd33   : > { %4775 = vmatprep.subr.bf16.mxu0 %v5088_v12  ;;  %4430 = vmatprep.mubr.msk.f32.mxu1 %vm5089_vm1, %v5090_v20 }
 0xd36   : > { %4777 = vmatpush3.bf16.msra.mxu0 %v4776_v22 }
 0xd37   : > { %4423 = vmatprep.subr.mxu0 %v5090_v20 }
 0xd39   : > { %4410 = vmatmul.mubr.msk.f32.vlgmr.msra.gmra.mrb[10].mxu0 %vm749_vm0, %v5576_v18 }
 0xd3a   : > { %4425 = vmatprep.mubr.msk.f32.mxu0 %vm5089_vm1, %v5090_v20 }
 0xe04   : > { %v2089_v24 = vpop.f32.mrb[8].mxu0  ;;  %v2255_v25 = vpop.f32.mrb[20].mxu1 }
 0xe05   : > { %v2256_v26 = vadd.f32 %v3919_v23, %v2255_v25  ;;  %v4400_v27 = vpop.f32.mrb[9].mxu0  ;;  %v4422_v28 = vpop.f32.mrb[21].mxu1  ;;  %v2090_v38 = vadd.f32 %v3905_v33, %v2089_v24  ;;  %v3924_v33 = vld [vmem:[%s6164_s10 + $0x20] sm:$0xff] }
 0xe07   : > { %4429 = vmatpush3.msra.mxu1 %v2256_v26 }
 0xe08   : > { %4790 = vmatprep.subr.bf16.mxu1 %v5088_v12 }
 0xe0c   : > { %v2172_v30 = vpop.f32.mrb[10].mxu0 }
 0xe0d   : > { %v2173_v34 = vadd.f32 %v3912_v29, %v2172_v30  ;;  %v4411_v35 = vpop.f32.mrb[11].mxu0  ;;  %v3950_v30 = vld [vmem:[%s6164_s10 + $0x30] sm:$0xff] }
 0xe0f   : > { %4424 = vmatpush3.xpose.msk.msra.mxu0 %vm1025_vm2, %v2173_v34  ;;  %v3925_v34 = vld [vmem:[%s6164_s10 + $0x28] sm:$0xff] }
 0xe10   : > { %4784 = vmatprep.subr.bf16.mxu0 %v5088_v12 }
 0xe12   : > { %4426 = vmatmul.mubr.msk.f32.vlgmr.msra.gmra.mrb[12].mxu0 %vm1025_vm2, %v2090_v38 }
 0xe13   : > { %4786 = vmatpush3.bf16.msra.mxu0 %v4785_v37  ;;  %4441 = vmatprep.mubr.msk.f32.mxu0 %vm5089_vm1, %v5090_v20  ;;  %v4806_v37 = vpack.c.bf16 %v3925_v34, %v3924_v33 }
 0xe14   : > { %4787 = vmatprep.subr.bf16.mxu0 %v5088_v12 }
 0xe17   : > { %4789 = vmatpush3.bf16.msra.mxu0 %v4788_v41 }
 0xe18   : > { %4796 = vmatprep.subr.bf16.mxu0 %v5088_v12 }
 0xe1a   : > { %4442 = vmatmul.mubr.msk.f32.vlgmr.msra.gmra.mrb[14].mxu0 %vm749_vm0, %v5576_v18 }
 0xe1b   : > { %4798 = vmatpush3.bf16.msra.mxu0 %v4797_v44  ;;  %4463 = vmatprep.mubr.msk.f32.mxu0 %vm5089_vm1, %v5090_v20 }
 0xe1c   : > { %4799 = vmatprep.subr.bf16.mxu0 %v5088_v12 }
 0xe1f   : > { %4801 = vmatpush3.bf16.msra.mxu0 %v4800_v47 }
 0xe20   : > { %4802 = vmatprep.subr.bf16.mxu0 %v5088_v12 }
 0xe22   : > { %4464 = vmatmul.mubr.msk.f32.vlgmr.msra.gmra.mrb[16].mxu0 %vm749_vm0, %v5576_v18 }
 0xe23   : > { %4480 = vmatprep.mubr.msk.f32.mxu0 %vm5089_vm1, %v5090_v20 }
 0xee5   : > { %v2331_v48 = vpop.f32.mrb[12].mxu0 }
 0xee6   : > { %v2335_v49 = vmul.f32 0.25, %v2331_v48  ;;  %v4427_v50 = vpop.f32.mrb[13].mxu0 }
 0xee8   : > { %v2336_v51 = vadd.f32 %v5400_v0, %v2335_v49 }
 0xeea   : > { %v2337_v52 = vsel %vm1110_vm3, %v2336_v51, -inf }
 0xeeb   : > { %2338 = vmax.xlane.f32.xlu0 %v2337_v52 }
 0xeed   : > { %v2503_v53 = vpop.f32.mrb[14].mxu0 }
 0xeee   : > { %v4443_v54 = vpop.f32.mrb[15].mxu0  ;;  %v2504_v16 = vadd.f32 %v3931_v11, %v2503_v53  ;;  %v3971_v11 = vld [vmem:[%s6170_s16 + $0x60] sm:$0xff] }
 0xef5   : > { %v2669_v55 = vpop.f32.mrb[16].mxu0 }
 0xef6   : > { %v4465_v56 = vpop.f32.mrb[17].mxu0  ;;  %v2670_v17 = vadd.f32 %v3945_v15, %v2669_v55  ;;  %v3960_v55 = vld [vmem:[%s6168_s14 + $0x20] sm:$0xff]  ;;  %v3973_v15 = vld [vmem:[%s6170_s16 + $0x70] sm:$0xff] }
 0xef7   : > { %v3961_v56 = vld [vmem:[%s6168_s14 + $0x28] sm:$0xff] }
 0xf78   : > { %v2339_v57 = vpop.xlane.xlu0 %2338 }
 0xf79   : > { %v2340_v58 = vsub.f32 %v2336_v51, %v2339_v57  ;;  %v3962_v57 = vld [vmem:[%s6168_s14 + $0x30] sm:$0xff] }
 0xf7b   : > { %v2341_v59 = vmul.f32 1.442695, %v2340_v58  ;;  %v3963_v58 = vld [vmem:[%s6168_s14 + $0x38] sm:$0xff] }
 0xf7d   : > { %5010 = vpow2.f32 %v2341_v59  ;;  %v4812_v59 = vpack.c.bf16 %v3963_v58, %v3962_v57  ;;  %v3981_v57 = vld [vmem:[%s6173_s19 + $0x1] ss:$0 sm:$0xff] }
 0xf87   : > { %v5011_v60 = vpop.eup %5010 }
 0xf88   : > { %v2343_v61 = vsel %vm1110_vm3, %v5011_v60, 0.0 }
 0xf89   : > { %2344 = vadd.xlane.f32.xlu1 %v2343_v61 }
0x1016   : > { %v2345_v62 = vpop.xlane.xlu1 %2344 }
0x1017   : > { %5012 = vrcp.f32 %v2345_v62 }
0x1021   : > { %v5013_v2 = vpop.eup %5012 }
0x1022   : > { %v2347_v4 = vmul.f32 %v5013_v2, %v5011_v60 }
0x1024   : > { %4431 = vmatmul.mubr.msk.f32.vlgmr.msra.gmra.mrb[22].mxu1 %vm1110_vm3, %v2347_v4 }
0x1025   : > { %4792 = vmatpush3.bf16.msra.mxu1 %v4791_v3  ;;  %4452 = vmatprep.mubr.msk.f32.mxu1 %vm5089_vm1, %v5090_v20  ;;  %v3959_v3 = vld [vmem:[%s6167_s13 + $0x1] ss:$0 sm:$0xff] }
0x1026   : > { %4793 = vmatprep.subr.bf16.mxu1 %v5088_v12 }
0x1029   : > { %4795 = vmatpush3.bf16.msra.mxu1 %v4794_v36  ;;  %v3968_v36 = vld [vmem:[%s6170_s16 + $0x48] sm:$0xff] }
0x102a   : > { %4466 = vmatprep.subr.mxu1 %v5090_v20 }
0x102c   : > { %4453 = vmatmul.mubr.msk.f32.vlgmr.msra.gmra.mrb[24].mxu1 %vm749_vm0, %v5576_v18 }
0x102d   : > { %4468 = vmatprep.mubr.msk.f32.mxu1 %vm5089_vm1, %v5090_v20 }
0x10f7   : > { %v2417_v7 = vpop.f32.mrb[22].mxu1 }
0x10f8   : > { %v4432_v8 = vpop.f32.mrb[23].mxu1 }
0x10f9   : > { %v3969_v8 = vld [vmem:[%s6170_s16 + $0x50] sm:$0xff] }
0x10ff   : > { %v2586_v10 = vpop.f32.mrb[24].mxu1 }
0x1100   : > { %v2587_v13 = vadd.f32 %v3938_v9, %v2586_v10  ;;  %v4454_v14 = vpop.f32.mrb[25].mxu1  ;;  %v3970_v9 = vld [vmem:[%s6170_s16 + $0x58] sm:$0xff] }
0x1101   : > { %v4818_v10 = vpack.c.bf16 %v3970_v9, %v3969_v8  ;;  %v3331_v9 = vld [vmem:[%s6176_s22 + $0x50] sm:$0xff] }
0x1102   : > { %4467 = vmatpush3.xpose.msk.msra.mxu1 %vm1025_vm2, %v2587_v13  ;;  %v3972_v13 = vld [vmem:[%s6170_s16 + $0x68] sm:$0xff] }
0x1103   : > { %4471 = vmatprep.subr.mxu1 %v5090_v20  ;;  %v4821_v14 = vpack.c.bf16 %v3972_v13, %v3971_v11  ;;  %v3333_v13 = vld [vmem:[%s6176_s22 + $0x60] sm:$0xff] }
0x1105   : > { %4469 = vmatmul.mubr.msk.f32.vlgmr.msra.gmra.mrb[26].mxu1 %vm1025_vm2, %v2504_v16  ;;  %v3974_v16 = vld [vmem:[%s6170_s16 + $0x78] sm:$0xff] }
0x1106   : > { %4472 = vmatpush3.msra.mxu1 %v2670_v17  ;;  %4473 = vmatprep.mubr.msk.f32.mxu1 %vm5089_vm1, %v5090_v20  ;;  %v4824_v17 = vpack.c.bf16 %v3974_v16, %v3973_v15  ;;  %v3335_v16 = vld [vmem:[%s6176_s22 + $0x70] sm:$0xff] }
0x1107   : > { %4805 = vmatprep.subr.bf16.mxu1 %v5088_v12 }
0x11d8   : > { %v2745_v19 = vpop.f32.mrb[26].mxu1 }
0x11d9   : > { %v2749_v21 = vmul.f32 0.25, %v2745_v19  ;;  %v4470_v22 = vpop.f32.mrb[27].mxu1  ;;  %v3965_v19 = vld [vmem:[%s6169_s15 + $0x1] ss:$0 sm:$0xff] }
0x11db   : > { %v2750_v23 = vadd.f32 %v5400_v0, %v2749_v21  ;;  %v4803_v0 = vpack.c.bf16 %v3951_v31, %v3950_v30 }
0x11dd   : > { %v2751_v24 = vsel %vm1110_vm3, %v2750_v23, -inf  ;;  %4804 = vmatpush3.bf16.msra.mxu0 %v4803_v0 }
0x11de   : > { %2752 = vmax.xlane.f32.xlu0 %v2751_v24  ;;  %4808 = vmatprep.subr.bf16.mxu0 %v5088_v12 }
0x126b   : > { %v2753_v25 = vpop.xlane.xlu0 %2752 }
0x126c   : > { %v2754_v26 = vsub.f32 %v2750_v23, %v2753_v25 }
0x126e   : > { %v2755_v27 = vmul.f32 1.442695, %v2754_v26 }
0x1270   : > { %5014 = vpow2.f32 %v2755_v27 }
0x127a   : > { %v5015_v28 = vpop.eup %5014 }
0x127b   : > { %v2757_v29 = vsel %vm1110_vm3, %v5015_v28, 0.0 }
0x127c   : > { %2758 = vadd.xlane.f32.xlu1 %v2757_v29 }
0x1309   : > { %v2759_v32 = vpop.xlane.xlu1 %2758 }
0x130a   : > { %5016 = vrcp.f32 %v2759_v32  ;;  %v3976_v32 = vld [vmem:[%s6171_s17 + $0x1] ss:$0 sm:$0xff] }
0x1314   : > { %v5017_v35 = vpop.eup %5016 }
0x1315   : > { %v2761_v38 = vmul.f32 %v5017_v35, %v5015_v28 }
0x1317   : > { %4474 = vmatmul.mubr.msk.f32.vlgmr.msra.gmra.mrb[28].mxu1 %vm1110_vm3, %v2761_v38 }
0x1318   : > { %4807 = vmatpush3.bf16.msra.mxu1 %v4806_v37  ;;  %4487 = vmatprep.mubr.msk.f32.mxu1 %vm5089_vm1, %v5090_v20 }
0x1319   : > { %4814 = vmatprep.subr.bf16.mxu1 %v5088_v12 }
0x131b   : > { %4488 = vmatmul.mubr.msk.f32.vlgmr.msra.gmra.mrb[30].mxu1 %vm1025_vm2, %v2417_v7  ;;  %v4815_v7 = vpack.c.bf16 %v3968_v36, %v3967_v6  ;;  %v3329_v36 = vld [vmem:[%s6176_s22 + $0x40] sm:$0xff] }
0x131c   : > { %4517 = vmatprep.mubr.msk.f32.mxu1 %vm5089_vm1, %v5090_v20 }
0x131d   : > { %4816 = vmatpush3.bf16.msra.mxu1 %v4815_v7  ;;  %v3330_v7 = vld [vmem:[%s6176_s22 + $0x48] sm:$0xff] }
0x131e   : > { %4817 = vmatprep.subr.bf16.mxu1 %v5088_v12  ;;  %v4845_v8 = vpack.c.bf16 %v3330_v7, %v3329_v36  ;;  %v3337_v36 = vld [vmem:[%s6177_s23] sm:$0x1] }
0x1321   : > { %4819 = vmatpush3.bf16.msra.mxu1 %v4818_v10  ;;  %v3332_v10 = vld [vmem:[%s6176_s22 + $0x58] sm:$0xff] }
0x1322   : > { %4820 = vmatprep.subr.bf16.mxu1 %v5088_v12  ;;  %v4848_v11 = vpack.c.bf16 %v3332_v10, %v3331_v9 }
0x1325   : > { %4822 = vmatpush3.bf16.msra.mxu1 %v4821_v14  ;;  %v3334_v14 = vld [vmem:[%s6176_s22 + $0x68] sm:$0xff] }
0x1326   : > { %4823 = vmatprep.subr.bf16.mxu1 %v5088_v12  ;;  %v4851_v15 = vpack.c.bf16 %v3334_v14, %v3333_v13  ;;  %v4015_v13 = vld [vmem:[%s6176_s22 + $0x178] sm:$0xff] }
0x1329   : > { %4825 = vmatpush3.bf16.msra.mxu1 %v4824_v17  ;;  %v3336_v17 = vld [vmem:[%s6176_s22 + $0x78] sm:$0xff] }
0x132a   : > { %4856 = vmatprep.subr.bf16.mxu1 %v5088_v12 }
0x13ea   : > { %v2831_v39 = vpop.f32.mrb[28].mxu1 }
0x13eb   : > { %v4475_v40 = vpop.f32.mrb[29].mxu1  ;;  %4481 = vmatmul.mubr.msk.f32.vlgmr.msra.gmra.mrb[18].mxu0 %vm1025_vm2, %v2831_v39 }
0x13ec   : > { %4498 = vmatprep.mubr.msk.f32.mxu0 %vm5089_vm1, %v5090_v20 }
0x13ee   : > { %v2980_v41 = vpop.f32.mrb[30].mxu1 }
0x13ef   : > { %v4489_v42 = vpop.f32.mrb[31].mxu1 }
0x14be   : > { %v2907_v43 = vpop.f32.mrb[18].mxu0 }
0x14bf   : > { %v2981_v44 = vadd.f32 %v2980_v41, %v2907_v43  ;;  %v4482_v45 = vpop.f32.mrb[19].mxu0 }
0x14c0   : > { %v3243_v45 = vld [vmem:[%s6174_s20 + $0x8] sm:$0xff] }
0x14c1   : > { %v2984_v47 = vadd.f32 %v2981_v44, %v5576_v18  ;;  %v4809_v18 = vpack.c.bf16 %v3961_v56, %v3960_v55  ;;  %v3242_v44 = vld [vmem:[%s6174_s20] sm:$0xff] }
0x14c2   : > { %v3321_v56 = vld [vmem:[%s6176_s22] sm:$0xff] }
0x14c3   : > { %v2993_v48 = vadd.f32 %v3955_v46, %v2984_v47  ;;  %4810 = vmatpush3.bf16.msra.mxu0 %v4809_v18  ;;  %v4827_v46 = vpack.c.bf16 %v3243_v45, %v3242_v44  ;;  %v3244_v47 = vld [vmem:[%s6174_s20 + $0x10] sm:$0xff]  ;;  %v3322_v18 = vld [vmem:[%s6176_s22 + $0x8] sm:$0xff] }
0x14c4   : > { %4811 = vmatprep.subr.bf16.mxu0 %v5088_v12 }
0x14c5   : > { %v2998_v49 = vsel %vm749_vm0, %v2993_v48, 0.0 }
0x14c6   : > { %2999 = vadd.xlane.f32.xlu0 %v2998_v49 }
0x14c7   : > { %4813 = vmatpush3.bf16.msra.mxu0 %v4812_v59  ;;  %v4833_v59 = vpack.c.bf16 %v3322_v18, %v3321_v56  ;;  %v4004_v56 = vld [vmem:[%s6176_s22 + $0x120] sm:$0xff]  ;;  %v4005_v18 = vld [vmem:[%s6176_s22 + $0x128] sm:$0xff] }
0x14c8   : > { %4826 = vmatprep.subr.bf16.mxu0 %v5088_v12 }
0x1553   : > { %v3000_v50 = vpop.xlane.xlu0 %2999 }
0x1554   : > { %v3001_v51 = vmul.f32 0.03125, %v3000_v50 }
0x1556   : > { %v3002_v52 = vsub.f32 %v2993_v48, %v3001_v51  ;;  %v3245_v48 = vld [vmem:[%s6174_s20 + $0x18] sm:$0xff] }
0x1557   : > { %v4830_v49 = vpack.c.bf16 %v3245_v48, %v3244_v47  ;;  %v3997_v47 = vld [vmem:[%s6176_s22 + $0xf0] sm:$0xff]  ;;  %v3998_v48 = vld [vmem:[%s6176_s22 + $0xf8] sm:$0xff] }
0x1558   : > { %v3003_v53 = vmul.f32 %v3002_v52, %v3002_v52 }
0x155a   : > { %v3004_v54 = vsel %vm749_vm0, %v3003_v53, 0.0 }
0x155b   : > { %3005 = vadd.xlane.f32.xlu1 %v3004_v54  ;;  %v3980_v54 = vld [vmem:[%s6172_s18 + $0x1] ss:$0 sm:$0xff] }
0x15e8   : > { %v3006_v60 = vpop.xlane.xlu1 %3005 }
0x15e9   : > { %v3007_v61 = vmul.f32 0.03125, %v3006_v60 }
0x15eb   : > { %v3008_v62 = vadd.f32 1e-12, %v3007_v61  ;;  %v3323_v61 = vld [vmem:[%s6176_s22 + $0x10] sm:$0xff] }
0x15ed   : > { %5018 = vrsqrt.f32 %v3008_v62  ;;  %v3324_v62 = vld [vmem:[%s6176_s22 + $0x18] sm:$0xff] }
0x15f7   : > { %v5019_v63 = vpop.eup %5018 }
0x15f8   : > { %v3010_v2 = vmul.f32 %v5019_v63, %v3002_v52  ;;  %v4836_v63 = vpack.c.bf16 %v3324_v62, %v3323_v61  ;;  %v4008_v61 = vld [vmem:[%s6176_s22 + $0x140] sm:$0xff]  ;;  %v4009_v62 = vld [vmem:[%s6176_s22 + $0x148] sm:$0xff] }
0x15fa   : > { %v3017_v4 = vmul.f32 %v3958_v1, %v3010_v2  ;;  %v3325_v1 = vld [vmem:[%s6176_s22 + $0x20] sm:$0xff]  ;;  %v3326_v2 = vld [vmem:[%s6176_s22 + $0x28] sm:$0xff] }
0x15fc   : > { %v3024_v5 = vadd.f32 %v3959_v3, %v3017_v4  ;;  %v4839_v3 = vpack.c.bf16 %v3326_v2, %v3325_v1  ;;  %v3327_v4 = vld [vmem:[%s6176_s22 + $0x30] sm:$0xff]  ;;  %v4011_v2 = vld [vmem:[%s6176_s22 + $0x158] sm:$0xff] }
0x15fd   : > { %v4010_v1 = vld [vmem:[%s6176_s22 + $0x150] sm:$0xff] }
0x15fe   : > { %4499 = vmatmul.mubr.msk.f32.vlgmr.msra.gmra.mrb[20].mxu0 %vm749_vm0, %v3024_v5 }
0x15ff   : > { %4528 = vmatprep.mubr.msk.f32.mxu0 %vm5089_vm1, %v5090_v20  ;;  %4828 = vmatpush3.bf16.msra.mxu0 %v4827_v46 }
0x1600   : > { %4829 = vmatprep.subr.bf16.mxu0 %v5088_v12 }
0x1603   : > { %4831 = vmatpush3.bf16.msra.mxu0 %v4830_v49  ;;  %v4878_v49 = vpack.c.bf16 %v3998_v48, %v3997_v47  ;;  %v4035_v47 = vld [vmem:[%s6176_s22 + $0x208] sm:$0xff] }
0x1604   : > { %4832 = vmatprep.subr.bf16.mxu0 %v5088_v12 }
0x16d1   : > { %v3107_v21 = vpop.f32.mrb[20].mxu0 }
0x16d2   : > { %v3108_v22 = vadd.f32 %v3965_v19, %v3107_v21  ;;  %v4500_v23 = vpop.f32.mrb[21].mxu0  ;;  %v4854_v19 = vpack.c.bf16 %v3336_v17, %v3335_v16  ;;  %v3983_v21 = vld [vmem:[%s6176_s22 + $0x80] sm:$0xff]  ;;  %v4018_v16 = vld [vmem:[%s6176_s22 + $0x188] sm:$0xff]  ;;  %v4019_v17 = vld [vmem:[%s6176_s22 + $0x190] sm:$0xff] }
0x16d3   : > { %v3985_v23 = vld [vmem:[%s6176_s22 + $0x90] sm:$0xff] }
0x16d4   : > { %v3112_v24 = vmul.f32 0.044715, %v3108_v22  ;;  %v3111_v30 = vmul.f32 0.5, %v3108_v22 }
0x16d6   : > { %v3113_v25 = vmul.f32 %v3112_v24, %v3108_v22 }
0x16d8   : > { %v3114_v26 = vmul.f32 %v3113_v25, %v3108_v22  ;;  %v3986_v25 = vld [vmem:[%s6176_s22 + $0x98] sm:$0xff] }
0x16da   : > { %v3115_v27 = vadd.f32 %v3114_v26, %v3108_v22  ;;  %v3984_v22 = vld [vmem:[%s6176_s22 + $0x88] sm:$0xff]  ;;  %v4860_v26 = vpack.c.bf16 %v3986_v25, %v3985_v23  ;;  %v4021_v23 = vld [vmem:[%s6176_s22 + $0x1a0] sm:$0xff] }
0x16db   : > { %v4857_v24 = vpack.c.bf16 %v3984_v22, %v3983_v21  ;;  %v4020_v21 = vld [vmem:[%s6176_s22 + $0x198] sm:$0xff] }
0x16dc   : > { %v3116_v28 = vmul.f32 0.7978846, %v3115_v27  ;;  %v3987_v27 = vld [vmem:[%s6176_s22 + $0xa0] sm:$0xff]  ;;  %v4908_v22 = vpack.c.bf16 %v4020_v21, %v4019_v17 }
0x16de   : > { %5020 = vtanh.f32 %v3116_v28  ;;  %v3988_v28 = vld [vmem:[%s6176_s22 + $0xa8] sm:$0xff] }
0x16e8   : > { %v5021_v29 = vpop.eup %5020 }
0x16e9   : > { %v3118_v31 = vadd.f32 1.0, %v5021_v29  ;;  %v4863_v29 = vpack.c.bf16 %v3988_v28, %v3987_v27  ;;  %v4024_v27 = vld [vmem:[%s6176_s22 + $0x1b8] sm:$0xff] }
0x16eb   : > { %v3119_v0 = vmul.f32 %v3118_v31, %v3111_v30  ;;  %v3989_v30 = vld [vmem:[%s6176_s22 + $0xb0] sm:$0xff]  ;;  %v3990_v31 = vld [vmem:[%s6176_s22 + $0xb8] sm:$0xff] }
0x16ed   : > { %4518 = vmatmul.mubr.msk.f32.vlgmr.msra.gmra.mrb[32].mxu1 %vm1903_vm4, %v3119_v0  ;;  %v4866_v0 = vpack.c.bf16 %v3990_v31, %v3989_v30  ;;  %v4026_v30 = vld [vmem:[%s6176_s22 + $0x1c8] sm:$0xff] }
0x16ee   : > { %4598 = vmatprep.mubr.msk.f32.mxu1 %vm5089_vm1, %v5090_v20  ;;  %4858 = vmatpush3.bf16.msra.mxu1 %v4857_v24  ;;  %v4022_v24 = vld [vmem:[%s6176_s22 + $0x1a8] sm:$0xff] }
0x16ef   : > { %4859 = vmatprep.subr.bf16.mxu1 %v5088_v12  ;;  %v4911_v25 = vpack.c.bf16 %v4022_v24, %v4021_v23 }
0x16f2   : > { %4861 = vmatpush3.bf16.msra.mxu1 %v4860_v26  ;;  %v4023_v26 = vld [vmem:[%s6176_s22 + $0x1b0] sm:$0xff] }
0x16f3   : > { %4862 = vmatprep.subr.bf16.mxu1 %v5088_v12  ;;  %v4914_v28 = vpack.c.bf16 %v4024_v27, %v4023_v26 }
0x16f6   : > { %4864 = vmatpush3.bf16.msra.mxu1 %v4863_v29  ;;  %v4025_v29 = vld [vmem:[%s6176_s22 + $0x1c0] sm:$0xff] }
0x16f7   : > { %4865 = vmatprep.subr.bf16.mxu1 %v5088_v12  ;;  %v4917_v31 = vpack.c.bf16 %v4026_v30, %v4025_v29 }
0x16fa   : > { %4867 = vmatpush3.bf16.msra.mxu1 %v4866_v0  ;;  %v4027_v0 = vld [vmem:[%s6176_s22 + $0x1d0] sm:$0xff] }
0x16fb   : > { %4868 = vmatprep.subr.bf16.mxu1 %v5088_v12 }
0x17c0   : > { %v3206_v33 = vpop.f32.mrb[32].mxu1 }
0x17c1   : > { %v3207_v34 = vadd.f32 %v3976_v32, %v3206_v33  ;;  %v4519_v35 = vpop.f32.mrb[33].mxu1  ;;  %v3991_v32 = vld [vmem:[%s6176_s22 + $0xc0] sm:$0xff]  ;;  %v3992_v33 = vld [vmem:[%s6176_s22 + $0xc8] sm:$0xff] }
0x17c2   : > { %v3993_v35 = vld [vmem:[%s6176_s22 + $0xd0] sm:$0xff] }
0x17c3   : > { %v3210_v37 = vadd.f32 %v3207_v34, %v3024_v5  ;;  %v3328_v5 = vld [vmem:[%s6176_s22 + $0x38] sm:$0xff]  ;;  %v4869_v34 = vpack.c.bf16 %v3992_v33, %v3991_v32 }
0x17c4   : > { %v4842_v6 = vpack.c.bf16 %v3328_v5, %v3327_v4  ;;  %v4012_v4 = vld [vmem:[%s6176_s22 + $0x160] sm:$0xff]  ;;  %v4013_v5 = vld [vmem:[%s6176_s22 + $0x168] sm:$0xff]  ;;  %v4028_v32 = vld [vmem:[%s6176_s22 + $0x1d8] sm:$0xff] }
0x17c5   : > { %v3215_v38 = vsel %vm749_vm0, %v3210_v37, 0.0  ;;  %4870 = vmatpush3.bf16.msra.mxu1 %v4869_v34  ;;  %v4920_v33 = vpack.c.bf16 %v4028_v32, %v4027_v0  ;;  %v4029_v34 = vld [vmem:[%s6176_s22 + $0x1e0] sm:$0xff] }
0x17c6   : > { %3216 = vadd.xlane.f32.xlu0 %v3215_v38  ;;  %4871 = vmatprep.subr.bf16.mxu1 %v5088_v12 }
0x1853   : > { %v3217_v39 = vpop.xlane.xlu0 %3216 }
0x1854   : > { %v3218_v40 = vmul.f32 0.03125, %v3217_v39  ;;  %v3995_v39 = vld [vmem:[%s6176_s22 + $0xe0] sm:$0xff] }
0x1856   : > { %v3219_v41 = vsub.f32 %v3210_v37, %v3218_v40  ;;  %v3994_v37 = vld [vmem:[%s6176_s22 + $0xd8] sm:$0xff]  ;;  %v3996_v40 = vld [vmem:[%s6176_s22 + $0xe8] sm:$0xff] }
0x1857   : > { %v4872_v38 = vpack.c.bf16 %v3994_v37, %v3993_v35  ;;  %v4030_v35 = vld [vmem:[%s6176_s22 + $0x1e8] sm:$0xff] }
0x1858   : > { %v3220_v42 = vmul.f32 %v3219_v41, %v3219_v41  ;;  %v4923_v37 = vpack.c.bf16 %v4030_v35, %v4029_v34 }
0x1859   : > { %4873 = vmatpush3.bf16.msra.mxu1 %v4872_v38  ;;  %v3999_v38 = vld [vmem:[%s6177_s23 + $0x1] sm:$0x1] }
0x185a   : > { %v3221_v43 = vsel %vm749_vm0, %v3220_v42, 0.0  ;;  %4874 = vmatprep.subr.bf16.mxu1 %v5088_v12  ;;  %v3246_v42 = vld [vmem:[%s6175_s21] sm:$0x1] }
0x185b   : > { %3222 = vadd.xlane.f32.xlu1 %v3221_v43 }
0x18e8   : > { %v3223_v50 = vpop.xlane.xlu1 %3222 }
0x18e9   : > { %v3224_v51 = vmul.f32 0.03125, %v3223_v50  ;;  %v4000_v50 = vld [vmem:[%s6176_s22 + $0x100] sm:$0xff] }
0x18eb   : > { %v3225_v52 = vadd.f32 1e-12, %v3224_v51  ;;  %v4001_v51 = vld [vmem:[%s6176_s22 + $0x108] sm:$0xff] }
0x18ed   : > { %5022 = vrsqrt.f32 %v3225_v52  ;;  %v4002_v52 = vld [vmem:[%s6176_s22 + $0x110] sm:$0xff] }
0x18f7   : > { %v5023_v53 = vpop.eup %5022 }
0x18f8   : > { %v3227_v55 = vmul.f32 %v5023_v53, %v3219_v41  ;;  %v4875_v41 = vpack.c.bf16 %v3996_v40, %v3995_v39  ;;  %v4881_v53 = vpack.c.bf16 %v4001_v51, %v4000_v50  ;;  %v4038_v51 = vld [vmem:[%s6176_s22 + $0x220] sm:$0xff] }
0x18fa   : > { %v3234_v58 = vmul.f32 %v3980_v54, %v3227_v55  ;;  %4876 = vmatpush3.bf16.msra.mxu1 %v4875_v41  ;;  %v4003_v54 = vld [vmem:[%s6176_s22 + $0x118] sm:$0xff] }
0x18fb   : > { %4877 = vmatprep.subr.bf16.mxu1 %v5088_v12  ;;  %v4884_v55 = vpack.c.bf16 %v4003_v54, %v4002_v52  ;;  %v4039_v52 = vld [vmem:[%s6176_s22 + $0x228] sm:$0xff]  ;;  %v4040_v54 = vld [vmem:[%s6176_s22 + $0x230] sm:$0xff] }
0x18fc   : > { %v3241_v60 = vadd.f32 %v3981_v57, %v3234_v58  ;;  %v4887_v57 = vpack.c.bf16 %v4005_v18, %v4004_v56  ;;  %v4006_v58 = vld [vmem:[%s6176_s22 + $0x130] sm:$0xff]  ;;  %v4042_v18 = vld [vmem:[%s6176_s22 + $0x240] sm:$0xff] }
0x18fe   : > { %4529 = vmatmul.mubr.msk.f32.vlgmr.msra.gmra.mrb[22].mxu0 %vm749_vm0, %v3241_v60  ;;  %4879 = vmatpush3.bf16.msra.mxu1 %v4878_v49  ;;  %v4037_v49 = vld [vmem:[%s6176_s22 + $0x218] sm:$0xff] }
0x18ff   : > { %4834 = vmatpush3.bf16.msra.mxu0 %v4833_v59  ;;  %4563 = vmatprep.mubr.msk.f32.mxu0 %vm5089_vm1, %v5090_v20  ;;  %v4007_v59 = vld [vmem:[%s6176_s22 + $0x138] sm:$0xff] }
0x1900   : > { %4835 = vmatprep.subr.bf16.mxu0 %v5088_v12  ;;  %4904 = vmatprep.subr.bf16.mxu1 %v5088_v12  ;;  %v4890_v60 = vpack.c.bf16 %v4007_v59, %v4006_v58  ;;  %v4044_v59 = vld [vmem:[%s6176_s22 + $0x250] sm:$0xff] }
0x1903   : > { %4837 = vmatpush3.bf16.msra.mxu0 %v4836_v63  ;;  %v4893_v63 = vpack.c.bf16 %v4009_v62, %v4008_v61  ;;  %v4046_v62 = vld [vmem:[%s6176_s22 + $0x260] sm:$0xff] }
0x1904   : > { %4838 = vmatprep.subr.bf16.mxu0 %v5088_v12 }
0x1907   : > { %4840 = vmatpush3.bf16.msra.mxu0 %v4839_v3  ;;  %v4896_v3 = vpack.c.bf16 %v4011_v2, %v4010_v1  ;;  %v4016_v2 = vld [vmem:[%s6177_s23 + $0x2] sm:$0x1] }
0x1908   : > { %4841 = vmatprep.subr.bf16.mxu0 %v5088_v12 }
0x190b   : > { %4843 = vmatpush3.bf16.msra.mxu0 %v4842_v6  ;;  %v4899_v6 = vpack.c.bf16 %v4013_v5, %v4012_v4 }
0x190c   : > { %4844 = vmatprep.subr.bf16.mxu0 %v5088_v12 }
0x190f   : > { %4846 = vmatpush3.bf16.msra.mxu0 %v4845_v8 }
0x1910   : > { %4847 = vmatprep.subr.bf16.mxu0 %v5088_v12 }
0x1913   : > { %4849 = vmatpush3.bf16.msra.mxu0 %v4848_v11  ;;  %v4014_v11 = vld [vmem:[%s6176_s22 + $0x170] sm:$0xff] }
0x1914   : > { %4850 = vmatprep.subr.bf16.mxu0 %v5088_v12  ;;  %v4902_v14 = vpack.c.bf16 %v4015_v13, %v4014_v11 }
0x1917   : > { %4852 = vmatpush3.bf16.msra.mxu0 %v4851_v15  ;;  %v4017_v15 = vld [vmem:[%s6176_s22 + $0x180] sm:$0xff] }
0x1918   : > { %4853 = vmatprep.subr.bf16.mxu0 %v5088_v12 }
0x191b   : > { %4855 = vmatpush3.bf16.msra.mxu0 %v4854_v19  ;;  %v4905_v19 = vpack.c.bf16 %v4018_v16, %v4017_v15 }
0x191c   : > { %4880 = vmatprep.subr.bf16.mxu0 %v5088_v12 }
0x19d1   : > { %v3316_v43 = vpop.f32.mrb[22].mxu0 }
0x19d2   : > { %v3317_v44 = vadd.f32 %v3316_v43, %v3246_v42  ;;  %v4530_v45 = vpop.f32.mrb[23].mxu0  ;;  %v4031_v43 = vld [vmem:[%s6176_s22 + $0x1f0] sm:$0xff] }
0x19d4   : > { %v3320_v46 = vmax.f32 %v3317_v44, 0.0  ;;  %v4032_v44 = vld [vmem:[%s6176_s22 + $0x1f8] sm:$0xff] }
0x19d5   : > { %v4926_v45 = vpack.c.bf16 %v4032_v44, %v4031_v43 }
0x19d6   : > { %4564 = vmatmul.mubr.f32.vlgmr.msra.gmra.mrb[24].mxu0 %v3320_v46  ;;  %v4034_v46 = vld [vmem:[%s6176_s22 + $0x200] sm:$0xff] }
0x19d7   : > { %4633 = vmatprep.mubr.msk.f32.mxu0 %vm5089_vm1, %v5090_v20  ;;  %4882 = vmatpush3.bf16.msra.mxu0 %v4881_v53  ;;  %v4929_v48 = vpack.c.bf16 %v4035_v47, %v4034_v46  ;;  %v4935_v53 = vpack.c.bf16 %v4039_v52, %v4038_v51 }
0x19d8   : > { %4883 = vmatprep.subr.bf16.mxu0 %v5088_v12 }
0x19db   : > { %4885 = vmatpush3.bf16.msra.mxu0 %v4884_v55  ;;  %v4041_v55 = vld [vmem:[%s6176_s22 + $0x238] sm:$0xff] }
0x19dc   : > { %4886 = vmatprep.subr.bf16.mxu0 %v5088_v12  ;;  %v4938_v56 = vpack.c.bf16 %v4041_v55, %v4040_v54 }
0x19df   : > { %4888 = vmatpush3.bf16.msra.mxu0 %v4887_v57  ;;  %v4043_v57 = vld [vmem:[%s6176_s22 + $0x248] sm:$0xff] }
0x19e0   : > { %4889 = vmatprep.subr.bf16.mxu0 %v5088_v12  ;;  %v4941_v58 = vpack.c.bf16 %v4043_v57, %v4042_v18 }
0x19e3   : > { %4891 = vmatpush3.bf16.msra.mxu0 %v4890_v60  ;;  %v4045_v60 = vld [vmem:[%s6176_s22 + $0x258] sm:$0xff] }
0x19e4   : > { %4892 = vmatprep.subr.bf16.mxu0 %v5088_v12  ;;  %v4944_v61 = vpack.c.bf16 %v4045_v60, %v4044_v59 }
0x19e7   : > { %4894 = vmatpush3.bf16.msra.mxu0 %v4893_v63  ;;  %v4047_v63 = vld [vmem:[%s6176_s22 + $0x268] sm:$0xff] }
0x19e8   : > { %4895 = vmatprep.subr.bf16.mxu0 %v5088_v12  ;;  %v4947_v1 = vpack.c.bf16 %v4047_v63, %v4046_v62 }
0x19eb   : > { %4897 = vmatpush3.bf16.msra.mxu0 %v4896_v3 }
0x19ec   : > { %4898 = vmatprep.subr.bf16.mxu0 %v5088_v12 }
0x19ef   : > { %4900 = vmatpush3.bf16.msra.mxu0 %v4899_v6 }
0x19f0   : > { %4901 = vmatprep.subr.bf16.mxu0 %v5088_v12 }
0x19f3   : > { %4903 = vmatpush3.bf16.msra.mxu0 %v4902_v14  ;;  %v4050_v14 = vld [vmem:[%s6177_s23 + $0x4] sm:$0x1] }
0x19f4   : > { %4928 = vmatprep.subr.bf16.mxu0 %v5088_v12 }
0x1aa9   : > { %v3404_v7 = vpop.f32.mrb[24].mxu0 }
0x1aaa   : > { %v3405_v8 = vadd.f32 %v3404_v7, %v3337_v36  ;;  %v4565_v9 = vpop.f32.mrb[25].mxu0  ;;  %v4048_v36 = vld [vmem:[%s6176_s22 + $0x270] sm:$0xff]  ;;  %v4049_v7 = vld [vmem:[%s6176_s22 + $0x278] sm:$0xff] }
0x1aac   : > { %v3408_v10 = vmax.f32 %v3405_v8, 0.0  ;;  %v4033_v8 = vld [vmem:[%s6177_s23 + $0x3] sm:$0x1] }
0x1aae   : > { %4599 = vmatmul.mubr.f32.vlgmr.msra.gmra.mrb[34].mxu1 %v3408_v10 }
0x1aaf   : > { %4668 = vmatprep.mubr.msk.f32.mxu1 %vm5089_vm1, %v5090_v20  ;;  %4906 = vmatpush3.bf16.msra.mxu1 %v4905_v19 }
0x1ab0   : > { %4907 = vmatprep.subr.bf16.mxu1 %v5088_v12 }
0x1ab3   : > { %4909 = vmatpush3.bf16.msra.mxu1 %v4908_v22 }
0x1ab4   : > { %4910 = vmatprep.subr.bf16.mxu1 %v5088_v12 }
0x1ab7   : > { %4912 = vmatpush3.bf16.msra.mxu1 %v4911_v25 }
0x1ab8   : > { %4913 = vmatprep.subr.bf16.mxu1 %v5088_v12 }
0x1abb   : > { %4915 = vmatpush3.bf16.msra.mxu1 %v4914_v28 }
0x1abc   : > { %4916 = vmatprep.subr.bf16.mxu1 %v5088_v12 }
0x1abf   : > { %4918 = vmatpush3.bf16.msra.mxu1 %v4917_v31 }
0x1ac0   : > { %4919 = vmatprep.subr.bf16.mxu1 %v5088_v12 }
0x1ac3   : > { %4921 = vmatpush3.bf16.msra.mxu1 %v4920_v33 }
0x1ac4   : > { %4922 = vmatprep.subr.bf16.mxu1 %v5088_v12 }
0x1ac7   : > { %4924 = vmatpush3.bf16.msra.mxu1 %v4923_v37 }
0x1ac8   : > { %4925 = vmatprep.subr.bf16.mxu1 %v5088_v12 }
0x1acb   : > { %4927 = vmatpush3.bf16.msra.mxu1 %v4926_v45 }
0x1b81   : > { %v3494_v39 = vpop.f32.mrb[34].mxu1 }
0x1b82   : > { %v3495_v40 = vadd.f32 %v3999_v38, %v3494_v39  ;;  %v4600_v41 = vpop.f32.mrb[35].mxu1 }
0x1b84   : > { %v3498_v42 = vmax.f32 %v3495_v40, 0.0 }
0x1b86   : > { %4634 = vmatmul.mubr.f32.vlgmr.msra.gmra.mrb[26].mxu0 %v3498_v42 }
0x1b87   : > { %4703 = vmatprep.mubr.msk.f32.mxu0 %vm5089_vm1, %v5090_v20  ;;  %v4036_v20 = vld [vmem:[%s6176_s22 + $0x210] sm:$0xff]  ;;  %4930 = vmatpush3.bf16.msra.mxu0 %v4929_v48 }
0x1b88   : > { %v4932_v50 = vpack.c.bf16 %v4037_v49, %v4036_v20  ;;  %4931 = vmatprep.subr.bf16.mxu0 %v5088_v12 }
0x1b8b   : > { %4933 = vmatpush3.bf16.msra.mxu0 %v4932_v50 }
0x1b8c   : > { %4934 = vmatprep.subr.bf16.mxu0 %v5088_v12 }
0x1b8f   : > { %4936 = vmatpush3.bf16.msra.mxu0 %v4935_v53 }
0x1b90   : > { %4937 = vmatprep.subr.bf16.mxu0 %v5088_v12 }
0x1b93   : > { %4939 = vmatpush3.bf16.msra.mxu0 %v4938_v56 }
0x1b94   : > { %4940 = vmatprep.subr.bf16.mxu0 %v5088_v12 }
0x1b97   : > { %4942 = vmatpush3.bf16.msra.mxu0 %v4941_v58 }
0x1b98   : > { %4943 = vmatprep.subr.bf16.mxu0 %v5088_v12 }
0x1b9b   : > { %4945 = vmatpush3.bf16.msra.mxu0 %v4944_v61 }
0x1b9c   : > { %4946 = vmatprep.subr.bf16.mxu0 %v5088_v12 }
0x1b9f   : > { %4948 = vmatpush3.bf16.msra.mxu0 %v4947_v1 }
0x1ba0   : > { %4949 = vmatprep.subr.bf16.mxu0 %v5088_v12  ;;  %v4950_v12 = vpack.c.bf16 %v4049_v7, %v4048_v36 }
0x1ba3   : > { %4951 = vmatpush3.bf16.msra.mxu0 %v4950_v12 }
0x1c59   : > { %v3584_v3 = vpop.f32.mrb[26].mxu0 }
0x1c5a   : > { %v3585_v4 = vadd.f32 %v4016_v2, %v3584_v3  ;;  %v4635_v5 = vpop.f32.mrb[27].mxu0 }
0x1c5c   : > { %v3588_v6 = vmax.f32 %v3585_v4, 0.0 }
0x1c5e   : > { %4669 = vmatmul.mubr.f32.vlgmr.msra.gmra.mrb[36].mxu1 %v3588_v6 }
0x1d31   : > { %v3674_v9 = vpop.f32.mrb[36].mxu1 }
0x1d32   : > { %v3675_v10 = vadd.f32 %v4033_v8, %v3674_v9  ;;  %v4670_v11 = vpop.f32.mrb[37].mxu1 }
0x1d34   : > { %v3678_v13 = vmax.f32 %v3675_v10, 0.0 }
0x1d36   : > { %4704 = vmatmul.mubr.f32.vlgmr.msra.gmra.mrb[28].mxu0 %v3678_v13 }
0x1e09   : > { %v3764_v15 = vpop.f32.mrb[28].mxu0 }
0x1e0a   : > { %v3765_v16 = vadd.f32 %v4050_v14, %v3764_v15  ;;  %v4705_v17 = vpop.f32.mrb[29].mxu0 }
0x1e0c   : > { %3768 = vst [vmem:[%s738_s4] sm:$0x1] %v3765_v16 }
0x1e0d   : > { %5037 = shalt.err (!%p5034_p3)
}
0x1e0e   : > { %s5038_s2 = scalar_lea.hbm %s6112_s3, 16  ;;  %s5042_s4 = scalar_lea.hbm %s6231_s1, 32 }
0x1e0f   : > { %p5039_p4 = scmp.ne.s32.totalorder %s6112_s3, %s5038_s2  ;;  %p5043_p9 = scmp.lt.u32.totalorder %s6112_s3, %s6231_s1 }
0x1e10   : > { %p5044_p10 = scmp.lt.u32.totalorder %s5042_s4, %s5038_s2  ;;  %p5046_p12 = scmp.lt.u32.totalorder %s5038_s2, %s6112_s3 }
0x1e11   : > { %p5040_p7 = pnand %p5039_p4, %p5255_p5 }
0x1e12   : > { %p5045_p11 = por %p5044_p10, %p5043_p9 }
0x1e13   : > { %p5041_p8 = pneg %p5040_p7 }
0x1e14   : > { %p5047_p13 = por %p5046_p12, %p5045_p11 }
0x1e16   : > { %p5048_p0 = pnand %p5047_p13, %p5041_p8 }
0x1e18   : > { %5051 = shalt.err (!%p5048_p0)
}
0x1e19   : > { %4952 = dma.vmem_to_hbm [thread:$0]  (%p5255_p5), %s6114_s6, 16, %s6112_s3, %s3770_s30  }
0x1e1a PF: > { %s6232_s7 = sld [smem:[#allocation8_spill]]  ;;  %s6233_s27 = sld [smem:[#allocation5_spill]] }
0x1e20   : > { %p4958_p1 = scmp.ge.s32.totalorder %s6232_s7, 2  ;;  %s3794_s5 = sand.u32 1, %s6233_s27  }
0x1e21   : > { %s3795_s8 = scalar_lea.sflag [#allocation3], %s3794_s5 }
0x1e22   : > { %p4955_p2 = pnand %p4958_p1, %p5259_p6 }
0x1e24   : > { %5069 = dma.done.wait (!%p4955_p2), %s3795_s8, 16  }
0x1e25   : > { %5071 = vsyncadd (!%p4955_p2), %s3795_s8, 4294967280  ;;  %s6235_s28 = sld [smem:[#allocation10_spill]]  ;;  %s6236_s5 = sld [smem:[#allocation6_spill]] }
0x1e26   : > { %s6237_s26 = sld [smem:[#allocation7_spill]]  ;;  %s6238_s27 = sld [smem:[#allocation11_spill]] }
0x1e2b   : > { %p34_p3 = scmp.ge.s32.totalorder %s6235_s28, 4  }
0x1e2d   :  { %36 = sbr.rel (!%p34_p3) target bundleno = 14 (0xe), region = 192 }
0x1e34   :  { %3799 = vsyncpa [#allocation3], 1 }
0x1e35   :  { %3801 = vsyncpa [#allocation3 + $0x1], 1 }

</bundles_post_ra>
